<compile_context>
chip_gen: v6e
topology: v6e:2x2x1
jax: 0.10.0
libtpu: 0.0.40
codegen_flags: <defaults>
</compile_context>

<pallas_src>
import math
from functools import partial

import jax
import jax.numpy as jnp
from jax.experimental import pallas as pl
from jax.experimental.pallas import tpu as pltpu


# ------------------------------ Pallas kernels ------------------------------

def _dense_kernel(x_ref, w_ref, b_ref, o_ref, *, activation=None):
    y = jnp.dot(x_ref[...], w_ref[...], preferred_element_type=jnp.float32)
    y = y + b_ref[...]
    if activation == "relu":
        y = jnp.maximum(y, 0.0)
    elif activation == "tanh":
        y = jnp.tanh(y)
    o_ref[...] = y


def dense(x, w, b, activation=None):
    """x: (M, K); w: (K, N) (pre-transposed); b: (1, N) -> (M, N). Single block."""
    M, _ = x.shape
    N = w.shape[1]
    return pl.pallas_call(
        partial(_dense_kernel, activation=activation),
        out_shape=jax.ShapeDtypeStruct((M, N), jnp.float32),
    )(x, w, b)


def _encoder_layer_kernel(x_ref, m_ref,
                          wqkv_ref, bqkv_ref, wo_ref, bo_ref,
                          g1_ref, be1_ref,
                          w1_ref, b1_ref, w2_ref, b2_ref,
                          g2_ref, be2_ref,
                          o_ref, *, num_heads, eps):
    """Fused post-norm TransformerEncoderLayer for one batch element."""
    x = x_ref[0]                       # (S, D)
    m = m_ref[0]                       # (1, S) additive key-padding mask
    S, D = x.shape
    Hd = D // num_heads
    scale = 1.0 / math.sqrt(Hd)

    def _ln(y, g, b):
        mu = jnp.mean(y, axis=-1, keepdims=True)
        yc = y - mu
        var = jnp.mean(yc * yc, axis=-1, keepdims=True)
        return yc * jax.lax.rsqrt(var + eps) * g + b

    # ---- self-attention: packed QKV, per-head loop, out_proj fused as a sum ----
    qkv = jnp.dot(x, wqkv_ref[...], preferred_element_type=jnp.float32) + bqkv_ref[...]
    wo = wo_ref[...]                   # (D, D)
    attn_out = jnp.zeros_like(x)       # (S, D)
    for hh in range(num_heads):
        lo = hh * Hd
        q = qkv[:, lo:lo + Hd]                       # (S, Hd)
        k = qkv[:, D + lo:D + lo + Hd]               # (S, Hd)
        v = qkv[:, 2 * D + lo:2 * D + lo + Hd]       # (S, Hd)
        s = jax.lax.dot_general(q, k, (((1,), (1,)), ((), ())),
                                preferred_element_type=jnp.float32) * scale
        s = s + m                                    # broadcast over query rows
        s = s - jnp.max(s, axis=-1, keepdims=True)
        p = jnp.exp(s)
        p = p * pl.reciprocal(jnp.sum(p, axis=-1, keepdims=True), approx=True)
        ctx = jnp.dot(p, v, preferred_element_type=jnp.float32)       # (S, Hd)
        # concat(heads) @ Wo  ==  sum_h head_h @ Wo[h*Hd:(h+1)*Hd, :]
        attn_out = attn_out + jnp.dot(ctx, wo[lo:lo + Hd, :],
                                      preferred_element_type=jnp.float32)
    attn_out = attn_out + bo_ref[...]

    # ---- residual + LayerNorm 1 ----
    h1 = _ln(x + attn_out, g1_ref[...], be1_ref[...])

    # ---- feed-forward + residual + LayerNorm 2 ----
    ff = jnp.maximum(jnp.dot(h1, w1_ref[...], preferred_element_type=jnp.float32)
                     + b1_ref[...], 0.0)
    ff = jnp.dot(ff, w2_ref[...], preferred_element_type=jnp.float32) + b2_ref[...]
    o_ref[0] = _ln(h1 + ff, g2_ref[...], be2_ref[...])


def encoder_layer(h, add_mask, L, num_heads, eps=1e-5):
    """h: (B, S, D); add_mask: (B, 1, S) additive f32 mask -> (B, S, D)."""
    B, S, D = h.shape
    spec_h = pl.BlockSpec((1, S, D), lambda b: (b, 0, 0))
    spec_m = pl.BlockSpec((1, 1, S), lambda b: (b, 0, 0))
    wspec = lambda a: pl.BlockSpec(a.shape, lambda b: (0, 0))   # full-array weights
    return pl.pallas_call(
        partial(_encoder_layer_kernel, num_heads=num_heads, eps=eps),
        grid=(B,),
        in_specs=[spec_h, spec_m,
                  wspec(L["in_proj_w"]), wspec(L["in_proj_b"]),
                  wspec(L["out_proj_w"]), wspec(L["out_proj_b"]),
                  wspec(L["ln1_g"]), wspec(L["ln1_b"]),
                  wspec(L["lin1_w"]), wspec(L["lin1_b"]),
                  wspec(L["lin2_w"]), wspec(L["lin2_b"]),
                  wspec(L["ln2_g"]), wspec(L["ln2_b"])],
        out_specs=spec_h,
        out_shape=jax.ShapeDtypeStruct((B, S, D), jnp.float32),
        compiler_params=pltpu.CompilerParams(dimension_semantics=("parallel",)),
    )(h, add_mask,
      L["in_proj_w"], L["in_proj_b"], L["out_proj_w"], L["out_proj_b"],
      L["ln1_g"], L["ln1_b"],
      L["lin1_w"], L["lin1_b"], L["lin2_w"], L["lin2_b"],
      L["ln2_g"], L["ln2_b"])


def _head_kernel(t_ref, m_ref, watt_ref, batt_ref, w1_ref, b1_ref, w2_ref, b2_ref,
                 o_ref):
    """Fused attention-pooling head + classifier MLP for one batch element."""
    t = t_ref[0]                       # (S, D) transformer output
    m = m_ref[0]                       # (S, 1), 1.0 where padded
    e = jnp.tanh(jnp.dot(t, watt_ref[...], preferred_element_type=jnp.float32)
                 + batt_ref[...])                                   # (S, D)
    logits = jnp.sum(e * t, axis=-1, keepdims=True)                 # (S, 1)
    logits = jnp.where(m > 0.5, -10000.0, logits)                   # masked_fill
    logits = logits - jnp.max(logits, axis=0, keepdims=True)
    w = jnp.exp(logits)
    w = w * pl.reciprocal(jnp.sum(w, axis=0, keepdims=True), approx=True)
    pooled = jnp.sum(w * t, axis=0, keepdims=True)                  # (1, D)
    s = jnp.tanh(jnp.dot(pooled, w1_ref[...], preferred_element_type=jnp.float32)
                 + b1_ref[...])                                     # (1, C1)
    o_ref[0] = jnp.dot(s, w2_ref[...], preferred_element_type=jnp.float32) \
               + b2_ref[...]                                        # (1, 4)


def head_forward(trans, pad_mask_f, params):
    """trans: (B, S, D); pad_mask_f: (B, S, 1) -> (B, 4)."""
    B, S, D = trans.shape
    spec_t = pl.BlockSpec((1, S, D), lambda b: (b, 0, 0))
    spec_m = pl.BlockSpec((1, S, 1), lambda b: (b, 0, 0))
    spec_o = pl.BlockSpec((1, 1, 4), lambda b: (b, 0, 0))
    wspec = lambda a: pl.BlockSpec(a.shape, lambda b: (0, 0))
    out = pl.pallas_call(
        _head_kernel,
        grid=(B,),
        in_specs=[spec_t, spec_m,
                  wspec(params["last_att_w"]), wspec(params["last_att_b"]),
                  wspec(params["cls1_w"]), wspec(params["cls1_b"]),
                  wspec(params["cls2_w"]), wspec(params["cls2_b"])],
        out_specs=spec_o,
        out_shape=jax.ShapeDtypeStruct((B, 1, 4), jnp.float32),
        compiler_params=pltpu.CompilerParams(dimension_semantics=("parallel",)),
    )(trans, pad_mask_f,
      params["last_att_w"], params["last_att_b"],
      params["cls1_w"], params["cls1_b"],
      params["cls2_w"], params["cls2_b"])
    return out[:, 0, :]


# --------------------------- parameters / buffers ---------------------------

def init_params(key, vocab_size, embed_dims, input_dims, num_heads, hidden_dims,
                num_layers, classifier_mlp_hidden):
    # All linear weights are stored pre-transposed as (in_features, out_features)
    # so kernels do x @ W directly (no wrapper-side transposes).
    def xavier(k, fan_in, fan_out):
        bound = math.sqrt(6.0 / (fan_in + fan_out))
        return jax.random.uniform(k, (fan_in, fan_out), jnp.float32, -bound, bound)

    keys = iter(jax.random.split(key, 64))
    p = {}

    emb = jax.random.normal(next(keys), (vocab_size, embed_dims), jnp.float32) * 0.1
    emb = emb.at[vocab_size - 1].set(0.0)      # padding_idx row
    p["embedding"] = emb

    final_embed_dims = embed_dims + 2
    if input_dims != final_embed_dims:
        p["embed2input_w"] = xavier(next(keys), final_embed_dims, input_dims)
        p["embed2input_b"] = jnp.zeros((1, input_dims), jnp.float32)

    layers = []
    for _ in range(num_layers):
        layers.append({
            "in_proj_w": xavier(next(keys), input_dims, 3 * input_dims),
            "in_proj_b": jnp.zeros((1, 3 * input_dims), jnp.float32),
            "out_proj_w": xavier(next(keys), input_dims, input_dims),
            "out_proj_b": jnp.zeros((1, input_dims), jnp.float32),
            "lin1_w": xavier(next(keys), input_dims, hidden_dims),
            "lin1_b": jnp.zeros((1, hidden_dims), jnp.float32),
            "lin2_w": xavier(next(keys), hidden_dims, input_dims),
            "lin2_b": jnp.zeros((1, input_dims), jnp.float32),
            "ln1_g": jnp.ones((1, input_dims), jnp.float32),
            "ln1_b": jnp.zeros((1, input_dims), jnp.float32),
            "ln2_g": jnp.ones((1, input_dims), jnp.float32),
            "ln2_b": jnp.zeros((1, input_dims), jnp.float32),
        })
    p["layers"] = layers

    p["last_att_w"] = xavier(next(keys), input_dims, input_dims)
    p["last_att_b"] = jnp.zeros((1, input_dims), jnp.float32)
    p["cls1_w"] = xavier(next(keys), input_dims, classifier_mlp_hidden)
    p["cls1_b"] = jnp.zeros((1, classifier_mlp_hidden), jnp.float32)
    p["cls2_w"] = xavier(next(keys), classifier_mlp_hidden, 4)
    p["cls2_b"] = jnp.zeros((1, 4), jnp.float32)

    # PositionalEncoding buffer, built exactly like the PyTorch module:
    # pe (max_len, d_model) -> unsqueeze(0).permute(1,0,2) -> (max_len, 1, d_model)
    max_len = 1000
    position = jnp.arange(max_len, dtype=jnp.float32)[:, None]
    div_term = jnp.exp(jnp.arange(0, embed_dims, 2, dtype=jnp.float32)
                       * (-math.log(10000.0) / embed_dims))
    pe = jnp.zeros((max_len, embed_dims), jnp.float32)
    pe = pe.at[:, 0::2].set(jnp.sin(position * div_term))
    pe = pe.at[:, 1::2].set(jnp.cos(position * div_term))
    p["pe"] = pe[:, None, :]
    return p


# -------------------------------- forward -----------------------------------

def transformer_model_forward(params, texts, target_buyer_vector, pad_masks,
                              num_heads):
    B, S = texts.shape
    E = params["embedding"].shape[1]
    D = params["last_att_w"].shape[0]      # trans_input_dims

    # embedding lookup + scale (glue)
    x = params["embedding"][texts] * math.sqrt(E)             # (B, S, E)
    # positional encoding — faithfully reproduces the original PyTorch indexing
    # (pe[:B] of shape (B,1,E) broadcast over the sequence axis); dropout=identity
    x = x + params["pe"][:B]

    src = jnp.concatenate([x, target_buyer_vector], axis=2)   # (B, S, E+2)
    if "embed2input_w" in params:
        src = dense(src.reshape(B * S, -1),
                    params["embed2input_w"], params["embed2input_b"]).reshape(B, S, D)

    # additive key-padding mask (0 where valid, -1e9 where padded; finite to
    # keep softmax NaN-free even for fully padded rows)
    add_mask = jnp.where(pad_masks, -1e9, 0.0).astype(jnp.float32)[:, None, :]

    h = src
    for L in params["layers"]:
        h = encoder_layer(h, add_mask, L, num_heads)          # fused layer kernel

    pad_mask_f = pad_masks.astype(jnp.float32)[:, :, None]    # (B, S, 1)
    return head_forward(h, pad_mask_f, params)                # (B, 4)


# --------------------------------- main --------------------------------------

if __name__ == "__main__":
    key = jax.random.PRNGKey(0)
    B, S = 2, 8
    vocab_size = 12              # len(embedding); padding_idx = 11
    embed_dims = 14              # final_embed_dims = 16
    trans_input_dims = 32        # != embed_dims + 2  ->  embed2input_space linear used
    num_heads = 4
    hidden_dims = 64
    num_layers = 2
    classifier_mlp_hidden = 16

    kp, kt, kv = jax.random.split(key, 3)
    params = init_params(kp, vocab_size, embed_dims, trans_input_dims, num_heads,
                         hidden_dims, num_layers, classifier_mlp_hidden)

    texts = jax.random.randint(kt, (B, S), 0, vocab_size - 1, dtype=jnp.int32)
    target_buyer_vector = jax.random.normal(kv, (B, S, 2), jnp.float32)
    pad_masks = jnp.broadcast_to(jnp.arange(S)[None, :] >= (S - 2), (B, S))
    texts = jnp.where(pad_masks, vocab_size - 1, texts)   # padded positions -> pad id

    fwd = jax.jit(partial(transformer_model_forward, num_heads=num_heads))
    out = fwd(params, texts, target_buyer_vector, pad_masks)
    out = jax.block_until_ready(out)
    assert out.shape == (B, 4) and out.dtype == jnp.float32
    assert bool(jnp.all(jnp.isfinite(out)))
    print("KERNEL_OK")
</pallas_src>

<mosaic_0001>
module attributes {stable_mosaic.version = 11 : i64} {
  func.func @_dense_kernel(%arg0: memref<16x16xf32, #tpu.memory_space<vmem>>, %arg1: memref<16x32xf32, #tpu.memory_space<vmem>>, %arg2: memref<1x32xf32, #tpu.memory_space<vmem>>, %arg3: memref<16x32xf32, #tpu.memory_space<vmem>>) attributes {dimension_semantics = [], scalar_prefetch = 0 : i64, scratch_operands = 0 : i64, tpu.core_type = #tpu.core_type<tc>} {
    %c0 = arith.constant 0 : index
    %c0_0 = arith.constant 0 : index
    %0 = vector.load %arg0[%c0, %c0_0] : memref<16x16xf32, #tpu.memory_space<vmem>>, vector<16x16xf32>
    %c0_1 = arith.constant 0 : index
    %c0_2 = arith.constant 0 : index
    %1 = vector.load %arg1[%c0_1, %c0_2] : memref<16x32xf32, #tpu.memory_space<vmem>>, vector<16x32xf32>
    %cst = arith.constant dense<0.000000e+00> : vector<16x32xf32>
    %2 = tpu.matmul %0, %1, %cst {dimension_numbers = #tpu.dot_dimension_numbers<[1], [0], [0], [1], [0, 0, 1, 1], [], []>} : vector<16x16xf32>, vector<16x32xf32>, vector<16x32xf32> -> vector<16x32xf32>
    %c0_3 = arith.constant 0 : index
    %c0_4 = arith.constant 0 : index
    %3 = vector.load %arg2[%c0_3, %c0_4] : memref<1x32xf32, #tpu.memory_space<vmem>>, vector<1x32xf32>
    %4 = vector.broadcast %3 : vector<1x32xf32> to vector<16x32xf32>
    %5 = arith.addf %2, %4 : vector<16x32xf32>
    %c0_5 = arith.constant 0 : index
    %c0_6 = arith.constant 0 : index
    %6 = vector.load %arg3[%c0_5, %c0_6] : memref<16x32xf32, #tpu.memory_space<vmem>>, vector<16x32xf32>
    tpu.vector_store %arg3[%c0_5, %c0_6], %5 {strides = array<i32>} : memref<16x32xf32, #tpu.memory_space<vmem>>, vector<16x32xf32>,
    return
  }
}

module attributes {stable_mosaic.version = 11 : i64} {
  func.func @_head_kernel(%arg0: i32, %arg1: memref<1x8x32xf32, #tpu.memory_space<vmem>>, %arg2: memref<1x8x1xf32, #tpu.memory_space<vmem>>, %arg3: memref<32x32xf32, #tpu.memory_space<vmem>>, %arg4: memref<1x32xf32, #tpu.memory_space<vmem>>, %arg5: memref<32x16xf32, #tpu.memory_space<vmem>>, %arg6: memref<1x16xf32, #tpu.memory_space<vmem>>, %arg7: memref<16x4xf32, #tpu.memory_space<vmem>>, %arg8: memref<1x4xf32, #tpu.memory_space<vmem>>, %arg9: memref<1x1x4xf32, #tpu.memory_space<vmem>>) attributes {dimension_semantics = [#tpu.dimension_semantics<parallel>], iteration_bounds = array<i64: 2>, scalar_prefetch = 0 : i64, scratch_operands = 0 : i64, tpu.core_type = #tpu.core_type<tc>, window_params = [{transform_indices = @transform_0, window_bounds = array<i64: 1, 8, 32>}, {transform_indices = @transform_1, window_bounds = array<i64: 1, 8, 1>}, {pipeline_mode = #tpu.pipeline_mode<synchronous>, transform_indices = @transform_2, window_bounds = array<i64: 32, 32>}, {pipeline_mode = #tpu.pipeline_mode<synchronous>, transform_indices = @transform_3, window_bounds = array<i64: 1, 32>}, {pipeline_mode = #tpu.pipeline_mode<synchronous>, transform_indices = @transform_4, window_bounds = array<i64: 32, 16>}, {pipeline_mode = #tpu.pipeline_mode<synchronous>, transform_indices = @transform_5, window_bounds = array<i64: 1, 16>}, {pipeline_mode = #tpu.pipeline_mode<synchronous>, transform_indices = @transform_6, window_bounds = array<i64: 16, 4>}, {pipeline_mode = #tpu.pipeline_mode<synchronous>, transform_indices = @transform_7, window_bounds = array<i64: 1, 4>}, {transform_indices = @transform_8, window_bounds = array<i64: 1, 1, 4>}]} {
    %c0 = arith.constant 0 : index
    %c0_0 = arith.constant 0 : index
    %c0_1 = arith.constant 0 : index
    %0 = vector.load %arg1[%c0, %c0_0, %c0_1] : memref<1x8x32xf32, #tpu.memory_space<vmem>>, vector<1x8x32xf32>
    %1 = vector.shape_cast %0 : vector<1x8x32xf32> to vector<8x32xf32>
    %c0_2 = arith.constant 0 : index
    %c0_3 = arith.constant 0 : index
    %c0_4 = arith.constant 0 : index
    %2 = vector.load %arg2[%c0_2, %c0_3, %c0_4] : memref<1x8x1xf32, #tpu.memory_space<vmem>>, vector<1x8x1xf32>
    %3 = vector.shape_cast %2 : vector<1x8x1xf32> to vector<8x1xf32>
    %c0_5 = arith.constant 0 : index
    %c0_6 = arith.constant 0 : index
    %4 = vector.load %arg3[%c0_5, %c0_6] : memref<32x32xf32, #tpu.memory_space<vmem>>, vector<32x32xf32>
    %cst = arith.constant dense<0.000000e+00> : vector<8x32xf32>
    %5 = tpu.matmul %1, %4, %cst {dimension_numbers = #tpu.dot_dimension_numbers<[1], [0], [0], [1], [0, 0, 1, 1], [], []>} : vector<8x32xf32>, vector<32x32xf32>, vector<8x32xf32> -> vector<8x32xf32>
    %c0_7 = arith.constant 0 : index
    %c0_8 = arith.constant 0 : index
    %6 = vector.load %arg4[%c0_7, %c0_8] : memref<1x32xf32, #tpu.memory_space<vmem>>, vector<1x32xf32>
    %7 = vector.broadcast %6 : vector<1x32xf32> to vector<8x32xf32>
    %8 = arith.addf %5, %7 : vector<8x32xf32>
    %9 = math.tanh %8 : vector<8x32xf32>
    %10 = arith.mulf %9, %1 : vector<8x32xf32>
    %cst_9 = arith.constant dense<0.000000e+00> : vector<8xf32>
    %11 = vector.multi_reduction <add>, %10, %cst_9 [1] : vector<8x32xf32> to vector<8xf32>
    %12 = vector.shape_cast %11 : vector<8xf32> to vector<8x1xf32>
    %cst_10 = arith.constant 5.000000e-01 : f32
    %13 = vector.broadcast %cst_10 : f32 to vector<8x1xf32>
    %14 = arith.cmpf ogt, %3, %13 : vector<8x1xf32>
    %cst_11 = arith.constant -1.000000e+04 : f32
    %15 = vector.broadcast %cst_11 : f32 to vector<8x1xf32>
    %16 = arith.select %14, %15, %12 : vector<8x1xi1>, vector<8x1xf32>
    %cst_12 = arith.constant dense<0xFF800000> : vector<1xf32>
    %17 = vector.multi_reduction <maximumf>, %16, %cst_12 [0] : vector<8x1xf32> to vector<1xf32>
    %18 = vector.shape_cast %17 : vector<1xf32> to vector<1x1xf32>
    %19 = vector.broadcast %18 : vector<1x1xf32> to vector<8x1xf32>
    %20 = arith.subf %16, %19 : vector<8x1xf32>
    %21 = math.exp %20 : vector<8x1xf32>
    %cst_13 = arith.constant dense<0.000000e+00> : vector<1xf32>
    %22 = vector.multi_reduction <add>, %21, %cst_13 [0] : vector<8x1xf32> to vector<1xf32>
    %23 = vector.shape_cast %22 : vector<1xf32> to vector<1x1xf32>
    %24 = tpu.reciprocal %23 {approx = true} : vector<1x1xf32> -> vector<1x1xf32>
    %25 = vector.broadcast %24 : vector<1x1xf32> to vector<8x1xf32>
    %26 = arith.mulf %21, %25 : vector<8x1xf32>
    %27 = vector.broadcast %26 : vector<8x1xf32> to vector<8x32xf32>
    %28 = arith.mulf %27, %1 : vector<8x32xf32>
    %cst_14 = arith.constant dense<0.000000e+00> : vector<32xf32>
    %29 = vector.multi_reduction <add>, %28, %cst_14 [0] : vector<8x32xf32> to vector<32xf32>
    %30 = vector.shape_cast %29 : vector<32xf32> to vector<1x32xf32>
    %c0_15 = arith.constant 0 : index
    %c0_16 = arith.constant 0 : index
    %31 = vector.load %arg5[%c0_15, %c0_16] : memref<32x16xf32, #tpu.memory_space<vmem>>, vector<32x16xf32>
    %cst_17 = arith.constant dense<0.000000e+00> : vector<1x16xf32>
    %32 = tpu.matmul %30, %31, %cst_17 {dimension_numbers = #tpu.dot_dimension_numbers<[1], [0], [0], [1], [0, 0, 1, 1], [], []>} : vector<1x32xf32>, vector<32x16xf32>, vector<1x16xf32> -> vector<1x16xf32>
    %c0_18 = arith.constant 0 : index
    %c0_19 = arith.constant 0 : index
    %33 = vector.load %arg6[%c0_18, %c0_19] : memref<1x16xf32, #tpu.memory_space<vmem>>, vector<1x16xf32>
    %34 = arith.addf %32, %33 : vector<1x16xf32>
    %35 = math.tanh %34 : vector<1x16xf32>
    %c0_20 = arith.constant 0 : index
    %c0_21 = arith.constant 0 : index
    %36 = vector.load %arg7[%c0_20, %c0_21] : memref<16x4xf32, #tpu.memory_space<vmem>>, vector<16x4xf32>
    %cst_22 = arith.constant dense<0.000000e+00> : vector<1x4xf32>
    %37 = tpu.matmul %35, %36, %cst_22 {dimension_numbers = #tpu.dot_dimension_numbers<[1], [0], [0], [1], [0, 0, 1, 1], [], []>} : vector<1x16xf32>, vector<16x4xf32>, vector<1x4xf32> -> vector<1x4xf32>
    %c0_23 = arith.constant 0 : index
    %c0_24 = arith.constant 0 : index
    %38 = vector.load %arg8[%c0_23, %c0_24] : memref<1x4xf32, #tpu.memory_space<vmem>>, vector<1x4xf32>
    %39 = arith.addf %37, %38 : vector<1x4xf32>
    %c0_25 = arith.constant 0 : index
    %c0_26 = arith.constant 0 : index
    %c0_27 = arith.constant 0 : index
    %40 = vector.load %arg9[%c0_25, %c0_26, %c0_27] : memref<1x1x4xf32, #tpu.memory_space<vmem>>, vector<1x1x4xf32>
    %41 = vector.shape_cast %40 : vector<1x1x4xf32> to vector<1x4xf32>
    %42 = vector.shape_cast %39 : vector<1x4xf32> to vector<1x1x4xf32>
    tpu.vector_store %arg9[%c0_25, %c0_26, %c0_27], %42 {strides = array<i32>} : memref<1x1x4xf32, #tpu.memory_space<vmem>>, vector<1x1x4xf32>,
    return
  }
  func.func @transform_0(%arg0: i32) -> (i32, i32, i32) {
    %c0_i32 = arith.constant 0 : i32
    %c0_i32_0 = arith.constant 0 : i32
    %c0_i32_1 = arith.constant 0 : i32
    return %arg0, %c0_i32, %c0_i32_0 : i32, i32, i32
  }
  func.func @transform_1(%arg0: i32) -> (i32, i32, i32) {
    %c0_i32 = arith.constant 0 : i32
    %c0_i32_0 = arith.constant 0 : i32
    %c0_i32_1 = arith.constant 0 : i32
    return %arg0, %c0_i32, %c0_i32_0 : i32, i32, i32
  }
  func.func @transform_2(%arg0: i32) -> (i32, i32) {
    %c0_i32 = arith.constant 0 : i32
    %c0_i32_0 = arith.constant 0 : i32
    %c0_i32_1 = arith.constant 0 : i32
    return %c0_i32, %c0_i32_0 : i32, i32
  }
  func.func @transform_3(%arg0: i32) -> (i32, i32) {
    %c0_i32 = arith.constant 0 : i32
    %c0_i32_0 = arith.constant 0 : i32
    %c0_i32_1 = arith.constant 0 : i32
    return %c0_i32, %c0_i32_0 : i32, i32
  }
  func.func @transform_4(%arg0: i32) -> (i32, i32) {
    %c0_i32 = arith.constant 0 : i32
    %c0_i32_0 = arith.constant 0 : i32
    %c0_i32_1 = arith.constant 0 : i32
    return %c0_i32, %c0_i32_0 : i32, i32
  }
  func.func @transform_5(%arg0: i32) -> (i32, i32) {
    %c0_i32 = arith.constant 0 : i32
    %c0_i32_0 = arith.constant 0 : i32
    %c0_i32_1 = arith.constant 0 : i32
    return %c0_i32, %c0_i32_0 : i32, i32
  }
  func.func @transform_6(%arg0: i32) -> (i32, i32) {
    %c0_i32 = arith.constant 0 : i32
    %c0_i32_0 = arith.constant 0 : i32
    %c0_i32_1 = arith.constant 0 : i32
    return %c0_i32, %c0_i32_0 : i32, i32
  }
  func.func @transform_7(%arg0: i32) -> (i32, i32) {
    %c0_i32 = arith.constant 0 : i32
    %c0_i32_0 = arith.constant 0 : i32
    %c0_i32_1 = arith.constant 0 : i32
    return %c0_i32, %c0_i32_0 : i32, i32
  }
  func.func @transform_8(%arg0: i32) -> (i32, i32, i32) {
    %c0_i32 = arith.constant 0 : i32
    %c0_i32_0 = arith.constant 0 : i32
    %c0_i32_1 = arith.constant 0 : i32
    return %arg0, %c0_i32, %c0_i32_0 : i32, i32, i32
  }
}

module attributes {stable_mosaic.version = 11 : i64} {
  func.func @_encoder_layer_kernel(%arg0: i32, %arg1: memref<1x8x32xf32, #tpu.memory_space<vmem>>, %arg2: memref<1x1x8xf32, #tpu.memory_space<vmem>>, %arg3: memref<32x96xf32, #tpu.memory_space<vmem>>, %arg4: memref<1x96xf32, #tpu.memory_space<vmem>>, %arg5: memref<32x32xf32, #tpu.memory_space<vmem>>, %arg6: memref<1x32xf32, #tpu.memory_space<vmem>>, %arg7: memref<1x32xf32, #tpu.memory_space<vmem>>, %arg8: memref<1x32xf32, #tpu.memory_space<vmem>>, %arg9: memref<32x64xf32, #tpu.memory_space<vmem>>, %arg10: memref<1x64xf32, #tpu.memory_space<vmem>>, %arg11: memref<64x32xf32, #tpu.memory_space<vmem>>, %arg12: memref<1x32xf32, #tpu.memory_space<vmem>>, %arg13: memref<1x32xf32, #tpu.memory_space<vmem>>, %arg14: memref<1x32xf32, #tpu.memory_space<vmem>>, %arg15: memref<1x8x32xf32, #tpu.memory_space<vmem>>) attributes {dimension_semantics = [#tpu.dimension_semantics<parallel>], iteration_bounds = array<i64: 2>, scalar_prefetch = 0 : i64, scratch_operands = 0 : i64, tpu.core_type = #tpu.core_type<tc>, window_params = [{transform_indices = @transform_0, window_bounds = array<i64: 1, 8, 32>}, {transform_indices = @transform_1, window_bounds = array<i64: 1, 1, 8>}, {pipeline_mode = #tpu.pipeline_mode<synchronous>, transform_indices = @transform_2, window_bounds = array<i64: 32, 96>}, {pipeline_mode = #tpu.pipeline_mode<synchronous>, transform_indices = @transform_3, window_bounds = array<i64: 1, 96>}, {pipeline_mode = #tpu.pipeline_mode<synchronous>, transform_indices = @transform_4, window_bounds = array<i64: 32, 32>}, {pipeline_mode = #tpu.pipeline_mode<synchronous>, transform_indices = @transform_5, window_bounds = array<i64: 1, 32>}, {pipeline_mode = #tpu.pipeline_mode<synchronous>, transform_indices = @transform_6, window_bounds = array<i64: 1, 32>}, {pipeline_mode = #tpu.pipeline_mode<synchronous>, transform_indices = @transform_7, window_bounds = array<i64: 1, 32>}, {pipeline_mode = #tpu.pipeline_mode<synchronous>, transform_indices = @transform_8, window_bounds = array<i64: 32, 64>}, {pipeline_mode = #tpu.pipeline_mode<synchronous>, transform_indices = @transform_9, window_bounds = array<i64: 1, 64>}, {pipeline_mode = #tpu.pipeline_mode<synchronous>, transform_indices = @transform_10, window_bounds = array<i64: 64, 32>}, {pipeline_mode = #tpu.pipeline_mode<synchronous>, transform_indices = @transform_11, window_bounds = array<i64: 1, 32>}, {pipeline_mode = #tpu.pipeline_mode<synchronous>, transform_indices = @transform_12, window_bounds = array<i64: 1, 32>}, {pipeline_mode = #tpu.pipeline_mode<synchronous>, transform_indices = @transform_13, window_bounds = array<i64: 1, 32>}, {transform_indices = @transform_14, window_bounds = array<i64: 1, 8, 32>}]} {
    %c0 = arith.constant 0 : index
    %c0_0 = arith.constant 0 : index
    %c0_1 = arith.constant 0 : index
    %0 = vector.load %arg1[%c0, %c0_0, %c0_1] : memref<1x8x32xf32, #tpu.memory_space<vmem>>, vector<1x8x32xf32>
    %1 = vector.shape_cast %0 : vector<1x8x32xf32> to vector<8x32xf32>
    %c0_2 = arith.constant 0 : index
    %c0_3 = arith.constant 0 : index
    %c0_4 = arith.constant 0 : index
    %2 = vector.load %arg2[%c0_2, %c0_3, %c0_4] : memref<1x1x8xf32, #tpu.memory_space<vmem>>, vector<1x1x8xf32>
    %3 = vector.shape_cast %2 : vector<1x1x8xf32> to vector<1x8xf32>
    %c0_5 = arith.constant 0 : index
    %c0_6 = arith.constant 0 : index
    %4 = vector.load %arg3[%c0_5, %c0_6] : memref<32x96xf32, #tpu.memory_space<vmem>>, vector<32x96xf32>
    %cst = arith.constant dense<0.000000e+00> : vector<8x96xf32>
    %5 = tpu.matmul %1, %4, %cst {dimension_numbers = #tpu.dot_dimension_numbers<[1], [0], [0], [1], [0, 0, 1, 1], [], []>} : vector<8x32xf32>, vector<32x96xf32>, vector<8x96xf32> -> vector<8x96xf32>
    %c0_7 = arith.constant 0 : index
    %c0_8 = arith.constant 0 : index
    %6 = vector.load %arg4[%c0_7, %c0_8] : memref<1x96xf32, #tpu.memory_space<vmem>>, vector<1x96xf32>
    %7 = vector.broadcast %6 : vector<1x96xf32> to vector<8x96xf32>
    %8 = arith.addf %5, %7 : vector<8x96xf32>
    %c0_9 = arith.constant 0 : index
    %c0_10 = arith.constant 0 : index
    %9 = vector.load %arg5[%c0_9, %c0_10] : memref<32x32xf32, #tpu.memory_space<vmem>>, vector<32x32xf32>
    %cst_11 = arith.constant 0.000000e+00 : f32
    %10 = vector.broadcast %cst_11 : f32 to vector<8x32xf32>
    %11 = vector.extract_strided_slice %8 {offsets = [0, 0], sizes = [8, 8], strides = [1, 1]} : vector<8x96xf32> to vector<8x8xf32>
    %12 = vector.extract_strided_slice %8 {offsets = [0, 32], sizes = [8, 8], strides = [1, 1]} : vector<8x96xf32> to vector<8x8xf32>
    %13 = vector.extract_strided_slice %8 {offsets = [0, 64], sizes = [8, 8], strides = [1, 1]} : vector<8x96xf32> to vector<8x8xf32>
    %cst_12 = arith.constant dense<0.000000e+00> : vector<8x8xf32>
    %14 = tpu.matmul %11, %12, %cst_12 {dimension_numbers = #tpu.dot_dimension_numbers<[1], [1], [0], [0], [0, 0, 1, 0], [], []>} : vector<8x8xf32>, vector<8x8xf32>, vector<8x8xf32> -> vector<8x8xf32>
    %cst_13 = arith.constant 0.353553385 : f32
    %15 = vector.broadcast %cst_13 : f32 to vector<8x8xf32>
    %16 = arith.mulf %14, %15 : vector<8x8xf32>
    %17 = vector.broadcast %3 : vector<1x8xf32> to vector<8x8xf32>
    %18 = arith.addf %16, %17 : vector<8x8xf32>
    %cst_14 = arith.constant dense<0xFF800000> : vector<8xf32>
    %19 = vector.multi_reduction <maximumf>, %18, %cst_14 [1] : vector<8x8xf32> to vector<8xf32>
    %20 = vector.shape_cast %19 : vector<8xf32> to vector<8x1xf32>
    %21 = vector.broadcast %20 : vector<8x1xf32> to vector<8x8xf32>
    %22 = arith.subf %18, %21 : vector<8x8xf32>
    %23 = math.exp %22 : vector<8x8xf32>
    %cst_15 = arith.constant dense<0.000000e+00> : vector<8xf32>
    %24 = vector.multi_reduction <add>, %23, %cst_15 [1] : vector<8x8xf32> to vector<8xf32>
    %25 = vector.shape_cast %24 : vector<8xf32> to vector<8x1xf32>
    %26 = tpu.reciprocal %25 {approx = true} : vector<8x1xf32> -> vector<8x1xf32>
    %27 = vector.broadcast %26 : vector<8x1xf32> to vector<8x8xf32>
    %28 = arith.mulf %23, %27 : vector<8x8xf32>
    %cst_16 = arith.constant dense<0.000000e+00> : vector<8x8xf32>
    %29 = tpu.matmul %28, %13, %cst_16 {dimension_numbers = #tpu.dot_dimension_numbers<[1], [0], [0], [1], [0, 0, 1, 1], [], []>} : vector<8x8xf32>, vector<8x8xf32>, vector<8x8xf32> -> vector<8x8xf32>
    %30 = vector.extract_strided_slice %9 {offsets = [0, 0], sizes = [8, 32], strides = [1, 1]} : vector<32x32xf32> to vector<8x32xf32>
    %cst_17 = arith.constant dense<0.000000e+00> : vector<8x32xf32>
    %31 = tpu.matmul %29, %30, %cst_17 {dimension_numbers = #tpu.dot_dimension_numbers<[1], [0], [0], [1], [0, 0, 1, 1], [], []>} : vector<8x8xf32>, vector<8x32xf32>, vector<8x32xf32> -> vector<8x32xf32>
    %32 = arith.addf %10, %31 : vector<8x32xf32>
    %33 = vector.extract_strided_slice %8 {offsets = [0, 8], sizes = [8, 8], strides = [1, 1]} : vector<8x96xf32> to vector<8x8xf32>
    %34 = vector.extract_strided_slice %8 {offsets = [0, 40], sizes = [8, 8], strides = [1, 1]} : vector<8x96xf32> to vector<8x8xf32>
    %35 = vector.extract_strided_slice %8 {offsets = [0, 72], sizes = [8, 8], strides = [1, 1]} : vector<8x96xf32> to vector<8x8xf32>
    %cst_18 = arith.constant dense<0.000000e+00> : vector<8x8xf32>
    %36 = tpu.matmul %33, %34, %cst_18 {dimension_numbers = #tpu.dot_dimension_numbers<[1], [1], [0], [0], [0, 0, 1, 0], [], []>} : vector<8x8xf32>, vector<8x8xf32>, vector<8x8xf32> -> vector<8x8xf32>
    %cst_19 = arith.constant 0.353553385 : f32
    %37 = vector.broadcast %cst_19 : f32 to vector<8x8xf32>
    %38 = arith.mulf %36, %37 : vector<8x8xf32>
    %39 = vector.broadcast %3 : vector<1x8xf32> to vector<8x8xf32>
    %40 = arith.addf %38, %39 : vector<8x8xf32>
    %cst_20 = arith.constant dense<0xFF800000> : vector<8xf32>
    %41 = vector.multi_reduction <maximumf>, %40, %cst_20 [1] : vector<8x8xf32> to vector<8xf32>
    %42 = vector.shape_cast %41 : vector<8xf32> to vector<8x1xf32>
    %43 = vector.broadcast %42 : vector<8x1xf32> to vector<8x8xf32>
    %44 = arith.subf %40, %43 : vector<8x8xf32>
    %45 = math.exp %44 : vector<8x8xf32>
    %cst_21 = arith.constant dense<0.000000e+00> : vector<8xf32>
    %46 = vector.multi_reduction <add>, %45, %cst_21 [1] : vector<8x8xf32> to vector<8xf32>
    %47 = vector.shape_cast %46 : vector<8xf32> to vector<8x1xf32>
    %48 = tpu.reciprocal %47 {approx = true} : vector<8x1xf32> -> vector<8x1xf32>
    %49 = vector.broadcast %48 : vector<8x1xf32> to vector<8x8xf32>
    %50 = arith.mulf %45, %49 : vector<8x8xf32>
    %cst_22 = arith.constant dense<0.000000e+00> : vector<8x8xf32>
    %51 = tpu.matmul %50, %35, %cst_22 {dimension_numbers = #tpu.dot_dimension_numbers<[1], [0], [0], [1], [0, 0, 1, 1], [], []>} : vector<8x8xf32>, vector<8x8xf32>, vector<8x8xf32> -> vector<8x8xf32>
    %52 = vector.extract_strided_slice %9 {offsets = [8, 0], sizes = [8, 32], strides = [1, 1]} : vector<32x32xf32> to vector<8x32xf32>
    %cst_23 = arith.constant dense<0.000000e+00> : vector<8x32xf32>
    %53 = tpu.matmul %51, %52, %cst_23 {dimension_numbers = #tpu.dot_dimension_numbers<[1], [0], [0], [1], [0, 0, 1, 1], [], []>} : vector<8x8xf32>, vector<8x32xf32>, vector<8x32xf32> -> vector<8x32xf32>
    %54 = arith.addf %32, %53 : vector<8x32xf32>
    %55 = vector.extract_strided_slice %8 {offsets = [0, 16], sizes = [8, 8], strides = [1, 1]} : vector<8x96xf32> to vector<8x8xf32>
    %56 = vector.extract_strided_slice %8 {offsets = [0, 48], sizes = [8, 8], strides = [1, 1]} : vector<8x96xf32> to vector<8x8xf32>
    %57 = vector.extract_strided_slice %8 {offsets = [0, 80], sizes = [8, 8], strides = [1, 1]} : vector<8x96xf32> to vector<8x8xf32>
    %cst_24 = arith.constant dense<0.000000e+00> : vector<8x8xf32>
    %58 = tpu.matmul %55, %56, %cst_24 {dimension_numbers = #tpu.dot_dimension_numbers<[1], [1], [0], [0], [0, 0, 1, 0], [], []>} : vector<8x8xf32>, vector<8x8xf32>, vector<8x8xf32> -> vector<8x8xf32>
    %cst_25 = arith.constant 0.353553385 : f32
    %59 = vector.broadcast %cst_25 : f32 to vector<8x8xf32>
    %60 = arith.mulf %58, %59 : vector<8x8xf32>
    %61 = vector.broadcast %3 : vector<1x8xf32> to vector<8x8xf32>
    %62 = arith.addf %60, %61 : vector<8x8xf32>
    %cst_26 = arith.constant dense<0xFF800000> : vector<8xf32>
    %63 = vector.multi_reduction <maximumf>, %62, %cst_26 [1] : vector<8x8xf32> to vector<8xf32>
    %64 = vector.shape_cast %63 : vector<8xf32> to vector<8x1xf32>
    %65 = vector.broadcast %64 : vector<8x1xf32> to vector<8x8xf32>
    %66 = arith.subf %62, %65 : vector<8x8xf32>
    %67 = math.exp %66 : vector<8x8xf32>
    %cst_27 = arith.constant dense<0.000000e+00> : vector<8xf32>
    %68 = vector.multi_reduction <add>, %67, %cst_27 [1] : vector<8x8xf32> to vector<8xf32>
    %69 = vector.shape_cast %68 : vector<8xf32> to vector<8x1xf32>
    %70 = tpu.reciprocal %69 {approx = true} : vector<8x1xf32> -> vector<8x1xf32>
    %71 = vector.broadcast %70 : vector<8x1xf32> to vector<8x8xf32>
    %72 = arith.mulf %67, %71 : vector<8x8xf32>
    %cst_28 = arith.constant dense<0.000000e+00> : vector<8x8xf32>
    %73 = tpu.matmul %72, %57, %cst_28 {dimension_numbers = #tpu.dot_dimension_numbers<[1], [0], [0], [1], [0, 0, 1, 1], [], []>} : vector<8x8xf32>, vector<8x8xf32>, vector<8x8xf32> -> vector<8x8xf32>
    %74 = vector.extract_strided_slice %9 {offsets = [16, 0], sizes = [8, 32], strides = [1, 1]} : vector<32x32xf32> to vector<8x32xf32>
    %cst_29 = arith.constant dense<0.000000e+00> : vector<8x32xf32>
    %75 = tpu.matmul %73, %74, %cst_29 {dimension_numbers = #tpu.dot_dimension_numbers<[1], [0], [0], [1], [0, 0, 1, 1], [], []>} : vector<8x8xf32>, vector<8x32xf32>, vector<8x32xf32> -> vector<8x32xf32>
    %76 = arith.addf %54, %75 : vector<8x32xf32>
    %77 = vector.extract_strided_slice %8 {offsets = [0, 24], sizes = [8, 8], strides = [1, 1]} : vector<8x96xf32> to vector<8x8xf32>
    %78 = vector.extract_strided_slice %8 {offsets = [0, 56], sizes = [8, 8], strides = [1, 1]} : vector<8x96xf32> to vector<8x8xf32>
    %79 = vector.extract_strided_slice %8 {offsets = [0, 88], sizes = [8, 8], strides = [1, 1]} : vector<8x96xf32> to vector<8x8xf32>
    %cst_30 = arith.constant dense<0.000000e+00> : vector<8x8xf32>
    %80 = tpu.matmul %77, %78, %cst_30 {dimension_numbers = #tpu.dot_dimension_numbers<[1], [1], [0], [0], [0, 0, 1, 0], [], []>} : vector<8x8xf32>, vector<8x8xf32>, vector<8x8xf32> -> vector<8x8xf32>
    %cst_31 = arith.constant 0.353553385 : f32
    %81 = vector.broadcast %cst_31 : f32 to vector<8x8xf32>
    %82 = arith.mulf %80, %81 : vector<8x8xf32>
    %83 = vector.broadcast %3 : vector<1x8xf32> to vector<8x8xf32>
    %84 = arith.addf %82, %83 : vector<8x8xf32>
    %cst_32 = arith.constant dense<0xFF800000> : vector<8xf32>
    %85 = vector.multi_reduction <maximumf>, %84, %cst_32 [1] : vector<8x8xf32> to vector<8xf32>
    %86 = vector.shape_cast %85 : vector<8xf32> to vector<8x1xf32>
    %87 = vector.broadcast %86 : vector<8x1xf32> to vector<8x8xf32>
    %88 = arith.subf %84, %87 : vector<8x8xf32>
    %89 = math.exp %88 : vector<8x8xf32>
    %cst_33 = arith.constant dense<0.000000e+00> : vector<8xf32>
    %90 = vector.multi_reduction <add>, %89, %cst_33 [1] : vector<8x8xf32> to vector<8xf32>
    %91 = vector.shape_cast %90 : vector<8xf32> to vector<8x1xf32>
    %92 = tpu.reciprocal %91 {approx = true} : vector<8x1xf32> -> vector<8x1xf32>
    %93 = vector.broadcast %92 : vector<8x1xf32> to vector<8x8xf32>
    %94 = arith.mulf %89, %93 : vector<8x8xf32>
    %cst_34 = arith.constant dense<0.000000e+00> : vector<8x8xf32>
    %95 = tpu.matmul %94, %79, %cst_34 {dimension_numbers = #tpu.dot_dimension_numbers<[1], [0], [0], [1], [0, 0, 1, 1], [], []>} : vector<8x8xf32>, vector<8x8xf32>, vector<8x8xf32> -> vector<8x8xf32>
    %96 = vector.extract_strided_slice %9 {offsets = [24, 0], sizes = [8, 32], strides = [1, 1]} : vector<32x32xf32> to vector<8x32xf32>
    %cst_35 = arith.constant dense<0.000000e+00> : vector<8x32xf32>
    %97 = tpu.matmul %95, %96, %cst_35 {dimension_numbers = #tpu.dot_dimension_numbers<[1], [0], [0], [1], [0, 0, 1, 1], [], []>} : vector<8x8xf32>, vector<8x32xf32>, vector<8x32xf32> -> vector<8x32xf32>
    %98 = arith.addf %76, %97 : vector<8x32xf32>
    %c0_36 = arith.constant 0 : index
    %c0_37 = arith.constant 0 : index
    %99 = vector.load %arg6[%c0_36, %c0_37] : memref<1x32xf32, #tpu.memory_space<vmem>>, vector<1x32xf32>
    %100 = vector.broadcast %99 : vector<1x32xf32> to vector<8x32xf32>
    %101 = arith.addf %98, %100 : vector<8x32xf32>
    %102 = arith.addf %1, %101 : vector<8x32xf32>
    %c0_38 = arith.constant 0 : index
    %c0_39 = arith.constant 0 : index
    %103 = vector.load %arg7[%c0_38, %c0_39] : memref<1x32xf32, #tpu.memory_space<vmem>>, vector<1x32xf32>
    %c0_40 = arith.constant 0 : index
    %c0_41 = arith.constant 0 : index
    %104 = vector.load %arg8[%c0_40, %c0_41] : memref<1x32xf32, #tpu.memory_space<vmem>>, vector<1x32xf32>
    %cst_42 = arith.constant dense<0.000000e+00> : vector<8xf32>
    %105 = vector.multi_reduction <add>, %102, %cst_42 [1] : vector<8x32xf32> to vector<8xf32>
    %106 = vector.shape_cast %105 : vector<8xf32> to vector<8x1xf32>
    %cst_43 = arith.constant 3.200000e+01 : f32
    %107 = vector.broadcast %cst_43 : f32 to vector<8x1xf32>
    %108 = arith.divf %106, %107 : vector<8x1xf32>
    %109 = vector.broadcast %108 : vector<8x1xf32> to vector<8x32xf32>
    %110 = arith.subf %102, %109 : vector<8x32xf32>
    %111 = arith.mulf %110, %110 : vector<8x32xf32>
    %cst_44 = arith.constant dense<0.000000e+00> : vector<8xf32>
    %112 = vector.multi_reduction <add>, %111, %cst_44 [1] : vector<8x32xf32> to vector<8xf32>
    %113 = vector.shape_cast %112 : vector<8xf32> to vector<8x1xf32>
    %cst_45 = arith.constant 3.200000e+01 : f32
    %114 = vector.broadcast %cst_45 : f32 to vector<8x1xf32>
    %115 = arith.divf %113, %114 : vector<8x1xf32>
    %cst_46 = arith.constant 9.99999974E-6 : f32
    %116 = vector.broadcast %cst_46 : f32 to vector<8x1xf32>
    %117 = arith.addf %115, %116 : vector<8x1xf32>
    %118 = math.rsqrt %117 : vector<8x1xf32>
    %119 = vector.broadcast %118 : vector<8x1xf32> to vector<8x32xf32>
    %120 = arith.mulf %110, %119 : vector<8x32xf32>
    %121 = vector.broadcast %103 : vector<1x32xf32> to vector<8x32xf32>
    %122 = arith.mulf %120, %121 : vector<8x32xf32>
    %123 = vector.broadcast %104 : vector<1x32xf32> to vector<8x32xf32>
    %124 = arith.addf %122, %123 : vector<8x32xf32>
    %c0_47 = arith.constant 0 : index
    %c0_48 = arith.constant 0 : index
    %125 = vector.load %arg9[%c0_47, %c0_48] : memref<32x64xf32, #tpu.memory_space<vmem>>, vector<32x64xf32>
    %cst_49 = arith.constant dense<0.000000e+00> : vector<8x64xf32>
    %126 = tpu.matmul %124, %125, %cst_49 {dimension_numbers = #tpu.dot_dimension_numbers<[1], [0], [0], [1], [0, 0, 1, 1], [], []>} : vector<8x32xf32>, vector<32x64xf32>, vector<8x64xf32> -> vector<8x64xf32>
    %c0_50 = arith.constant 0 : index
    %c0_51 = arith.constant 0 : index
    %127 = vector.load %arg10[%c0_50, %c0_51] : memref<1x64xf32, #tpu.memory_space<vmem>>, vector<1x64xf32>
    %128 = vector.broadcast %127 : vector<1x64xf32> to vector<8x64xf32>
    %129 = arith.addf %126, %128 : vector<8x64xf32>
    %cst_52 = arith.constant 0.000000e+00 : f32
    %130 = vector.broadcast %cst_52 : f32 to vector<8x64xf32>
    %131 = arith.maximumf %129, %130 : vector<8x64xf32>
    %c0_53 = arith.constant 0 : index
    %c0_54 = arith.constant 0 : index
    %132 = vector.load %arg11[%c0_53, %c0_54] : memref<64x32xf32, #tpu.memory_space<vmem>>, vector<64x32xf32>
    %cst_55 = arith.constant dense<0.000000e+00> : vector<8x32xf32>
    %133 = tpu.matmul %131, %132, %cst_55 {dimension_numbers = #tpu.dot_dimension_numbers<[1], [0], [0], [1], [0, 0, 1, 1], [], []>} : vector<8x64xf32>, vector<64x32xf32>, vector<8x32xf32> -> vector<8x32xf32>
    %c0_56 = arith.constant 0 : index
    %c0_57 = arith.constant 0 : index
    %134 = vector.load %arg12[%c0_56, %c0_57] : memref<1x32xf32, #tpu.memory_space<vmem>>, vector<1x32xf32>
    %135 = vector.broadcast %134 : vector<1x32xf32> to vector<8x32xf32>
    %136 = arith.addf %133, %135 : vector<8x32xf32>
    %137 = arith.addf %124, %136 : vector<8x32xf32>
    %c0_58 = arith.constant 0 : index
    %c0_59 = arith.constant 0 : index
    %138 = vector.load %arg13[%c0_58, %c0_59] : memref<1x32xf32, #tpu.memory_space<vmem>>, vector<1x32xf32>
    %c0_60 = arith.constant 0 : index
    %c0_61 = arith.constant 0 : index
    %139 = vector.load %arg14[%c0_60, %c0_61] : memref<1x32xf32, #tpu.memory_space<vmem>>, vector<1x32xf32>
    %cst_62 = arith.constant dense<0.000000e+00> : vector<8xf32>
    %140 = vector.multi_reduction <add>, %137, %cst_62 [1] : vector<8x32xf32> to vector<8xf32>
    %141 = vector.shape_cast %140 : vector<8xf32> to vector<8x1xf32>
    %cst_63 = arith.constant 3.200000e+01 : f32
    %142 = vector.broadcast %cst_63 : f32 to vector<8x1xf32>
    %143 = arith.divf %141, %142 : vector<8x1xf32>
    %144 = vector.broadcast %143 : vector<8x1xf32> to vector<8x32xf32>
    %145 = arith.subf %137, %144 : vector<8x32xf32>
    %146 = arith.mulf %145, %145 : vector<8x32xf32>
    %cst_64 = arith.constant dense<0.000000e+00> : vector<8xf32>
    %147 = vector.multi_reduction <add>, %146, %cst_64 [1] : vector<8x32xf32> to vector<8xf32>
    %148 = vector.shape_cast %147 : vector<8xf32> to vector<8x1xf32>
    %cst_65 = arith.constant 3.200000e+01 : f32
    %149 = vector.broadcast %cst_65 : f32 to vector<8x1xf32>
    %150 = arith.divf %148, %149 : vector<8x1xf32>
    %cst_66 = arith.constant 9.99999974E-6 : f32
    %151 = vector.broadcast %cst_66 : f32 to vector<8x1xf32>
    %152 = arith.addf %150, %151 : vector<8x1xf32>
    %153 = math.rsqrt %152 : vector<8x1xf32>
    %154 = vector.broadcast %153 : vector<8x1xf32> to vector<8x32xf32>
    %155 = arith.mulf %145, %154 : vector<8x32xf32>
    %156 = vector.broadcast %138 : vector<1x32xf32> to vector<8x32xf32>
    %157 = arith.mulf %155, %156 : vector<8x32xf32>
    %158 = vector.broadcast %139 : vector<1x32xf32> to vector<8x32xf32>
    %159 = arith.addf %157, %158 : vector<8x32xf32>
    %c0_67 = arith.constant 0 : index
    %c0_68 = arith.constant 0 : index
    %c0_69 = arith.constant 0 : index
    %160 = vector.load %arg15[%c0_67, %c0_68, %c0_69] : memref<1x8x32xf32, #tpu.memory_space<vmem>>, vector<1x8x32xf32>
    %161 = vector.shape_cast %160 : vector<1x8x32xf32> to vector<8x32xf32>
    %162 = vector.shape_cast %159 : vector<8x32xf32> to vector<1x8x32xf32>
    tpu.vector_store %arg15[%c0_67, %c0_68, %c0_69], %162 {strides = array<i32>} : memref<1x8x32xf32, #tpu.memory_space<vmem>>, vector<1x8x32xf32>,
    return
  }
  func.func @transform_0(%arg0: i32) -> (i32, i32, i32) {
    %c0_i32 = arith.constant 0 : i32
    %c0_i32_0 = arith.constant 0 : i32
    %c0_i32_1 = arith.constant 0 : i32
    return %arg0, %c0_i32, %c0_i32_0 : i32, i32, i32
  }
  func.func @transform_1(%arg0: i32) -> (i32, i32, i32) {
    %c0_i32 = arith.constant 0 : i32
    %c0_i32_0 = arith.constant 0 : i32
    %c0_i32_1 = arith.constant 0 : i32
    return %arg0, %c0_i32, %c0_i32_0 : i32, i32, i32
  }
  func.func @transform_2(%arg0: i32) -> (i32, i32) {
    %c0_i32 = arith.constant 0 : i32
    %c0_i32_0 = arith.constant 0 : i32
    %c0_i32_1 = arith.constant 0 : i32
    return %c0_i32, %c0_i32_0 : i32, i32
  }
  func.func @transform_3(%arg0: i32) -> (i32, i32) {
    %c0_i32 = arith.constant 0 : i32
    %c0_i32_0 = arith.constant 0 : i32
    %c0_i32_1 = arith.constant 0 : i32
    return %c0_i32, %c0_i32_0 : i32, i32
  }
  func.func @transform_4(%arg0: i32) -> (i32, i32) {
    %c0_i32 = arith.constant 0 : i32
    %c0_i32_0 = arith.constant 0 : i32
    %c0_i32_1 = arith.constant 0 : i32
    return %c0_i32, %c0_i32_0 : i32, i32
  }
  func.func @transform_5(%arg0: i32) -> (i32, i32) {
    %c0_i32 = arith.constant 0 : i32
    %c0_i32_0 = arith.constant 0 : i32
    %c0_i32_1 = arith.constant 0 : i32
    return %c0_i32, %c0_i32_0 : i32, i32
  }
  func.func @transform_6(%arg0: i32) -> (i32, i32) {
    %c0_i32 = arith.constant 0 : i32
    %c0_i32_0 = arith.constant 0 : i32
    %c0_i32_1 = arith.constant 0 : i32
    return %c0_i32, %c0_i32_0 : i32, i32
  }
  func.func @transform_7(%arg0: i32) -> (i32, i32) {
    %c0_i32 = arith.constant 0 : i32
    %c0_i32_0 = arith.constant 0 : i32
    %c0_i32_1 = arith.constant 0 : i32
    return %c0_i32, %c0_i32_0 : i32, i32
  }
  func.func @transform_8(%arg0: i32) -> (i32, i32) {
    %c0_i32 = arith.constant 0 : i32
    %c0_i32_0 = arith.constant 0 : i32
    %c0_i32_1 = arith.constant 0 : i32
    return %c0_i32, %c0_i32_0 : i32, i32
  }
  func.func @transform_9(%arg0: i32) -> (i32, i32) {
    %c0_i32 = arith.constant 0 : i32
    %c0_i32_0 = arith.constant 0 : i32
    %c0_i32_1 = arith.constant 0 : i32
    return %c0_i32, %c0_i32_0 : i32, i32
  }
  func.func @transform_10(%arg0: i32) -> (i32, i32) {
    %c0_i32 = arith.constant 0 : i32
    %c0_i32_0 = arith.constant 0 : i32
    %c0_i32_1 = arith.constant 0 : i32
    return %c0_i32, %c0_i32_0 : i32, i32
  }
  func.func @transform_11(%arg0: i32) -> (i32, i32) {
    %c0_i32 = arith.constant 0 : i32
    %c0_i32_0 = arith.constant 0 : i32
    %c0_i32_1 = arith.constant 0 : i32
    return %c0_i32, %c0_i32_0 : i32, i32
  }
  func.func @transform_12(%arg0: i32) -> (i32, i32) {
    %c0_i32 = arith.constant 0 : i32
    %c0_i32_0 = arith.constant 0 : i32
    %c0_i32_1 = arith.constant 0 : i32
    return %c0_i32, %c0_i32_0 : i32, i32
  }
  func.func @transform_13(%arg0: i32) -> (i32, i32) {
    %c0_i32 = arith.constant 0 : i32
    %c0_i32_0 = arith.constant 0 : i32
    %c0_i32_1 = arith.constant 0 : i32
    return %c0_i32, %c0_i32_0 : i32, i32
  }
  func.func @transform_14(%arg0: i32) -> (i32, i32, i32) {
    %c0_i32 = arith.constant 0 : i32
    %c0_i32_0 = arith.constant 0 : i32
    %c0_i32_1 = arith.constant 0 : i32
    return %arg0, %c0_i32, %c0_i32_0 : i32, i32, i32
  }
}

</mosaic_0001>

<bundles_post_ra>
// kernel: transformer_model_forward.4
= control target key start
LH: loop header
LB: loop body
LE: loop exit
PB: predicated region body
PF: predicated region fallthrough
CT: control target
= control target key end

     0   :  { %vm25_vm0 = vcmask 130048   ;;  %vm107_vm1 = vcmask 261120   ;;  %s169_s1 = inlined_call_operand.vmem [shape: f32[16,32], index: 1, kind: input, shape index: {}]   ;;  %s170_s0 = inlined_call_operand.vmem [shape: f32[16,16], index: 0, kind: input, shape index: {}]   ;;  %s171_s2 = inlined_call_operand.vmem [shape: f32[1,32], index: 2, kind: input, shape index: {}]   ;;  %s172_s3 = inlined_call_operand.vmem [shape: f32[16,32], index: 3, kind: output, shape index: {}]  }
   0x1   :  { %v17_v0 = vld [vmem:[%s169_s1 + $0x8] sm:$0xff]  ;;  %v16_v1 = vld [vmem:[%s169_s1] sm:$0xff] }
   0x2   :  { %v14_v2 = vld [vmem:[%s170_s0] sm:$0xff]  ;;  %121 = vmatprep.subr.mxu0 %v17_v0  ;;  %v15_v3 = vld [vmem:[%s170_s0 + $0x8] sm:$0xff] }
   0x3   :  { %125 = vmatprep.mubr.msk.f32.mxu0 %vm25_vm0, %v14_v2  ;;  %122 = vmatpush3.msra.mxu0 %v17_v0  ;;  %v114_v4 = vld [vmem:[%s171_s2] ss:$0 sm:$0xff] }
   0x4   :  { %123 = vmatprep.subr.mxu0 %v16_v1 }
   0x5   :  { %124 = vmatpush3.msra.mxu0 %v16_v1 }
   0x6   :  { %126 = vmatmul.mubr.msk.f32.vlgmr.msra.gmra.mxu0 %vm25_vm0, %v15_v3 }
  0xc6   :  { %v127_v5 = vpop.f32.mrf.mxu0 }
  0xc7   :  { %v104_v6 = vadd.f32 %v127_v5, %v114_v4 }
  0xc8   :  { %v98_v7 = vpop.f32.mrf.mxu0 }
  0xc9   :  { %109 = vst.msk [vmem:[%s172_s3 + $0x8] sm:$0xff] %vm107_vm1, %v104_v6  ;;  %v99_v8 = vadd.f32 %v114_v4, %v98_v7 }
  0xcb   :  { %108 = vst.msk [vmem:[%s172_s3] sm:$0xff] %vm107_vm1, %v99_v8 }

// kernel: transformer_model_forward.7
= control target key start
LH: loop header
LB: loop body
LE: loop exit
PB: predicated region body
PF: predicated region fallthrough
CT: control target
= control target key end

     0   :  { %13 = vsyncpa [#allocation3], 0  ;;  %s1057_s0 = inlined_call_operand.vmem [shape: f32[2,8,32], index: 0, kind: input, shape index: {}]   ;;  %s1058_s1 = inlined_call_operand.vmem [shape: f32[2,8,1], index: 1, kind: input, shape index: {}]   ;;  %s1059_s2 = inlined_call_operand.vmem [shape: f32[32,32], index: 2, kind: input, shape index: {}]   ;;  %s1060_s3 = inlined_call_operand.vmem [shape: f32[1,32], index: 3, kind: input, shape index: {}]   ;;  %s1061_s4 = inlined_call_operand.vmem [shape: f32[32,16], index: 4, kind: input, shape index: {}]   ;;  %s1062_s5 = inlined_call_operand.vmem [shape: f32[1,16], index: 5, kind: input, shape index: {}]   ;;  %s1063_s6 = inlined_call_operand.vmem [shape: f32[16,4], index: 6, kind: input, shape index: {}]   ;;  %s1064_s7 = inlined_call_operand.vmem [shape: f32[1,4], index: 7, kind: input, shape index: {}]   ;;  %s1065_s8 = inlined_call_operand.hbm [shape: f32[2,1,4], index: 8, kind: output, shape index: {}]  }
   0x1   :  { %15 = vsyncpa [#allocation3 + $0x1], 0  ;;  %s899_s27 = smov 0   ;;  %s901_s28 = smov 0  }
   0x2   :  { %s903_s29 = smov 0   ;;  %s905_s30 = smov 0  }
   0x3 LB: > { %s920_s9 = sadd.s32 4294967295, %s848_s30   ;;  %s682_s10 = sadd.s32 4294967294, %s848_s30   ;;  %s848_s30 = sphi %s905_s30, %s1071_s30   ;;  %s844_s29 = sphi %s903_s29, %s1070_s29   ;;  %s840_s28 = sphi %s901_s28, %s1069_s28   ;;  %s836_s27 = sphi %s899_s27, %s1068_s27  }
   0x4   : > { %s924_s11 = sadd.s32 1, %s848_s30   ;;  %s206_s12 = sadd.s32 1, %s844_s29 }
   0x5   : > { %s203_s13 = ssub.s32 %s848_s30, %s924_s11  ;;  %p216_p0 = scmp.ne.s32.totalorder %s844_s29, %s840_s28 }
   0x6   : > { %p204_p1 = scmp.eq.s32.totalorder %s203_s13, 0  ;;  %p217_p2 = scmp.eq.s32.totalorder %s920_s9, 1 }
   0x7   : > { %p222_p3 = scmp.ne.s32.totalorder %s840_s28, %s836_s27  ;;  %p223_p4 = scmp.eq.s32.totalorder %s682_s10, 1 }
   0x8   : > { %s935_s14 = scalar_select %p204_p1, %s844_s29, %s206_s12  }
   0x9   : > { %p937_p5 = por %p217_p2, %p216_p0  ;;  %p941_p6 = por %p223_p4, %p222_p3 }
   0xa   : > { %p685_p7 = scmp.ge.s32.totalorder %s848_s30, 1  ;;  %p273_p8 = scmp.lt.s32.totalorder %s848_s30, 3 }
   0xc   : > { %p274_p9 = pnand %p685_p7, %p273_p8 }
   0xd   : > { %p309_p10 = scmp.lt.s32.totalorder (!%p274_p9), %s920_s9, 1  ;;  %s307_s23 = sand.u32 (!%p274_p9), 1, %s840_s28  }
   0xe   : > { %277 = sbr.rel (%p274_p9) target bundleno = 995 (0x3e3), region = 52  ;;  %s692_s26 = sshll.u32 (!%p274_p9), %s920_s9, 4 }
   0xf   : > { %s308_s10 = scalar_lea.vmem (!%p274_p9), [#allocation2], %s307_s23  ;;  %s1022_s18 = scalar_lea.hbm (!%p274_p9), %s1065_s8, %s692_s26 }
  0x10   : > { %s615_s12 = sshll.u32 (!%p274_p9), %s308_s10, 4  ;;  %s603_s19 = scalar_lea.sflag (!%p274_p9), [#allocation3], %s307_s23  ;;  %s616_s12 = int_to_ptr.vmem [resolvable:$true] %s615_s12 }
  0x11   : > { %s788_s20 = scalar_lea.vmem (!%p274_p9), %s616_s12, 16 }
  0x12   : > { %p789_p11 = scmp.ne.s32.totalorder (!%p274_p9), %s616_s12, %s788_s20 }
  0x13   : > { %v322_v0 = vld [vmem:[%s1059_s2 + $0x18] sm:$0xff]  ;;  %v850_v1 = vmov 0.0   ;;  %v321_v2 = vld [vmem:[%s1059_s2 + $0x10] sm:$0xff]  ;;  %vm851_vm0 = vmmov 0   ;;  %s958_s21 = scalar_select %p309_p10, %s920_s9, 1  ;;  %v320_v3 = vld [vmem:[%s1059_s2 + $0x8] sm:$0xff] }
  0x14   : > { %708 = vmatprep.subr.mxu0 %v850_v1  ;;  %716 = vmatprep.mubr.msk.f32.mxu0 %vm851_vm0, %v850_v1  ;;  %v319_v4 = vld [vmem:[%s1059_s2] sm:$0xff]  ;;  %vm330_vm1 = vcmask 261120   ;;  %v852_v13 = vmov 0   ;;  %vm411_vm3 = vcmask 7168   ;;  %v447_v36 = vld [vmem:[%s1061_s4 + $0x18] sm:$0xff]  ;;  %v446_v37 = vld [vmem:[%s1061_s4 + $0x10] sm:$0xff]  ;;  %p790_p12 = pnand %p789_p11, %p937_p5 }
  0x15   : > { %709 = vmatpush3.msra.mxu0 %v322_v0  ;;  %719 = vmatprep.subr.mxu1 %v850_v1  ;;  %s686_s24 = sshll.u32 %s958_s21, 3  ;;  %v688_v6 = vld [vmem:[%s1060_s3] ss:$0 sm:$0xff]  ;;  %v445_v38 = vld [vmem:[%s1061_s4 + $0x8] sm:$0xff]  ;;  %vm526_vm4 = vcmask 130048   ;;  %vm600_vm5 = vcmask 24576  }
  0x16   : > { %710 = vmatprep.subr.mxu0 %v850_v1  ;;  %727 = vmatprep.mubr.msk.f32.mxu1 %vm851_vm0, %v850_v1  ;;  %s312_s13 = scalar_lea.vmem %s1057_s0, %s686_s24  ;;  %s316_s21 = scalar_lea.vmem %s1058_s1, %s686_s24  ;;  %v444_v39 = vld [vmem:[%s1061_s4] sm:$0xff]  ;;  %v524_v49 = vld [vmem:[%s1063_s6 + $0x8] sm:$0xff] }
  0x17   : > { %711 = vmatpush3.msra.mxu0 %v321_v2  ;;  %v317_v5 = vld [vmem:[%s312_s13] sm:$0xff]  ;;  %779 = vset.pattern.permute.xlu0 %v852_v13  ;;  %p791_p13 = pneg %p790_p12  ;;  %s853_s9 = smov [#allocation2]  }
  0x18   : > { %712 = vmatprep.subr.mxu0 %v850_v1  ;;  %v318_v14 = vld [vmem:[%s316_s21] sm:$0xff]  ;;  %720 = vmatpush3.msra.mxu1 %v447_v36  ;;  %s792_s21 = sshll.u32 %s853_s9, 4  ;;  %s793_s21 = int_to_ptr.vmem [resolvable:$false] %s792_s21 }
  0x19   : > { %713 = vmatpush3.msra.mxu0 %v320_v3  ;;  %vm409_vm2 = vcmp.gt.f32.partialorder %v318_v14, 0.5  ;;  %721 = vmatprep.subr.mxu1 %v850_v1  ;;  %v523_v50 = vld [vmem:[%s1063_s6] sm:$0xff]  ;;  %s794_s22 = scalar_lea.vmem %s793_s21, 32  ;;  %p795_p0 = scmp.lt.s32.totalorder %s616_s12, %s793_s21 }
  0x1a   : > { %714 = vmatprep.subr.mxu0 %v850_v1  ;;  %722 = vmatpush3.msra.mxu1 %v446_v37  ;;  %v448_v51 = vld [vmem:[%s1062_s5] sm:$0x1]  ;;  %p796_p1 = scmp.lt.s32.totalorder %s794_s22, %s788_s20 }
  0x1b   : > { %715 = vmatpush3.msra.mxu0 %v319_v4  ;;  %723 = vmatprep.subr.mxu1 %v850_v1  ;;  %v525_v56 = vld [vmem:[%s1064_s7] sm:$0x1] }
  0x1c   : > { %717 = vmatmul.mubr.msk.f32.vlgmr.msra.gmra.mxu0 %vm330_vm1, %v317_v5  ;;  %730 = vmatprep.subr.mxu0 %v850_v1  ;;  %p797_p2 = por %p796_p1, %p795_p0 }
  0x1d   : > { %734 = vmatprep.mubr.msk.f32.mxu0 %vm851_vm0, %v850_v1  ;;  %724 = vmatpush3.msra.mxu1 %v445_v38 }
  0x1e   : > { %725 = vmatprep.subr.mxu1 %v850_v1  ;;  %731 = vmatpush3.msra.mxu0 %v524_v49  ;;  %p798_p3 = pnand %p797_p2, %p791_p13 }
  0x1f   : > { %726 = vmatpush3.msra.mxu1 %v444_v39  ;;  %732 = vmatprep.subr.mxu0 %v850_v1 }
  0x20   : > { %733 = vmatpush3.msra.mxu0 %v523_v50 }
  0xdc   : > { %v400_v7 = vpop.f32.mrf.mxu0 }
  0xdd   : > { %v401_v8 = vadd.f32 %v688_v6, %v400_v7 }
  0xde   : > { %v718_v9 = vpop.f32.mrf.mxu0 }
  0xdf   : > { %780 = vtanh.f32 %v401_v8 }
  0xec   : > { %v781_v10 = vpop.eup %780 }
  0xed   : > { %v405_v11 = vmul.f32 %v781_v10, %v317_v5 }
  0xef   : > { %v406_v12 = vsel %vm330_vm1, %v405_v11, 0.0 }
  0xf0   : > { %407 = vadd.xlane.f32.xlu0 %v406_v12 }
 0x179   : > { %v408_v15 = vpop.xlane.xlu0 %407 }
 0x17a   : > { %v410_v16 = vsel %vm409_vm2, -10000.0, %v408_v15 }
 0x17b   : > { %v412_v17 = vsel %vm411_vm3, %v410_v16, -inf }
 0x17c   : > { %v413_v18 = vrot.slane %v412_v17, 4 }
 0x17e   : > { %v414_v19 = vmax.f32 %v412_v17, %v413_v18 }
 0x180   : > { %v415_v20 = vrot.slane %v414_v19, 2 }
 0x182   : > { %v416_v21 = vmax.f32 %v414_v19, %v415_v20 }
 0x184   : > { %v417_v22 = vrot.slane %v416_v21, 1 }
 0x186   : > { %v418_v23 = vmax.f32 %v416_v21, %v417_v22 }
 0x188   : > { %v419_v24 = vsub.f32 %v410_v16, %v418_v23 }
 0x18a   : > { %v420_v25 = vmul.f32 1.442695, %v419_v24 }
 0x18c   : > { %782 = vpow2.f32 %v420_v25 }
 0x199   : > { %v783_v26 = vpop.eup %782 }
 0x19a   : > { %v422_v27 = vsel %vm411_vm3, %v783_v26, 0.0 }
 0x19b   : > { %v423_v28 = vrot.slane %v422_v27, 4 }
 0x19d   : > { %v424_v29 = vadd.f32 %v423_v28, %v422_v27 }
 0x19f   : > { %v425_v30 = vrot.slane %v424_v29, 2 }
 0x1a1   : > { %v426_v31 = vadd.f32 %v425_v30, %v424_v29 }
 0x1a3   : > { %v427_v32 = vrot.slane %v426_v31, 1 }
 0x1a5   : > { %v428_v33 = vadd.f32 %v427_v32, %v426_v31 }
 0x1a7   : > { %784 = vrcp.f32 %v428_v33 }
 0x1b4   : > { %v785_v34 = vpop.eup %784 }
 0x1b5   : > { %v430_v35 = vmul.f32 %v785_v34, %v783_v26 }
 0x1b7   : > { %433 = vperm.xlu0 %779, %v430_v35  }
 0x232   : > { %v434_v40 = vpop.permute.xlu0 %433 }
 0x233   : > { %v436_v41 = vmul.f32 %v434_v40, %v317_v5 }
 0x235   : > { %v437_v42 = vsel %vm330_vm1, %v436_v41, 0.0 }
 0x236   : > { %v438_v43 = vrot.slane %v437_v42, 4 }
 0x238   : > { %v439_v44 = vadd.f32 %v438_v43, %v437_v42 }
 0x23a   : > { %v440_v45 = vrot.slane %v439_v44, 2 }
 0x23c   : > { %v441_v46 = vadd.f32 %v440_v45, %v439_v44 }
 0x23e   : > { %v442_v47 = vrot.slane %v441_v46, 1 }
 0x240   : > { %v443_v48 = vadd.f32 %v442_v47, %v441_v46 }
 0x242   : > { %728 = vmatmul.mubr.msk.f32.vlgmr.msra.gmra.mxu1 %vm330_vm1, %v443_v48 }
 0x302   : > { %v518_v52 = vpop.f32.mrf.mxu1 }
 0x303   : > { %v519_v53 = vadd.f32 %v518_v52, %v448_v51 }
 0x304   : > { %v729_v54 = vpop.f32.mrf.mxu1 }
 0x305   : > { %786 = vtanh.f32 %v519_v53 }
 0x312   : > { %v787_v55 = vpop.eup %786 }
 0x313   : > { %735 = vmatmul.mubr.msk.f32.vlgmr.msra.gmra.mxu0 %vm526_vm4, %v787_v55 }
 0x3d3   : > { %v596_v57 = vpop.f32.mrf.mxu0 }
 0x3d4   : > { %v597_v58 = vadd.f32 %v596_v57, %v525_v56 }
 0x3d5   : > { %v736_v59 = vpop.f32.mrf.mxu0 }
 0x3d6   : > { %601 = vst.msk [vmem:[%s308_s10] sm:$0x1] %vm600_vm5, %v597_v58 }
 0x3d7   : > { %801 = shalt.err (!%p798_p3)
}
 0x3d8   : > { %s802_s24 = scalar_lea.hbm %s1022_s18, 16  ;;  %s806_s26 = scalar_lea.hbm %s1065_s8, 32 }
 0x3d9   : > { %p803_p4 = scmp.ne.s32.totalorder %s1022_s18, %s802_s24  ;;  %p807_p9 = scmp.lt.s32.totalorder %s1022_s18, %s1065_s8 }
 0x3da   : > { %p808_p10 = scmp.lt.s32.totalorder %s806_s26, %s802_s24 }
 0x3db   : > { %p804_p7 = pnand %p803_p4, %p937_p5 }
 0x3dc   : > { %p809_p11 = por %p808_p10, %p807_p9 }
 0x3dd   : > { %p805_p8 = pneg %p804_p7 }
 0x3df   : > { %p810_p12 = pnand %p809_p11, %p805_p8 }
 0x3e1   : > { %813 = shalt.err (!%p810_p12)
}
 0x3e2   : > { %737 = dma.vmem_to_hbm [thread:$0]  (%p937_p5), %s616_s12, 16, %s1022_s18, %s603_s19  }
 0x3e3 PF: > { %p743_p13 = scmp.ge.s32.totalorder %s848_s30, 2  ;;  %s627_s17 = sand.u32 1, %s836_s27  }
 0x3e4   : > { %s628_s20 = scalar_lea.sflag [#allocation3], %s627_s17 }
 0x3e5   : > { %p740_p0 = pnand %p743_p13, %p941_p6 }
 0x3e7   : > { %p741_p1 = pneg %p740_p0 }
 0x3e9   : > { %831 = dma.done.wait (%p741_p1), %s628_s20, 16  }
 0x3ea   : > { %833 = vsyncadd (%p741_p1), %s628_s20, 4294967280  ;;  %p18_p2 = scmp.ge.s32.totalorder %s924_s11, 4   ;;  %s1068_s27 = smov %s840_s28 }
 0x3eb   : > { %s1069_s28 = smov %s844_s29  ;;  %s1070_s29 = smov %s935_s14 }
 0x3ec   : > { %s1071_s30 = smov %s924_s11  ;;  %20 = sbr.rel (!%p18_p2) target bundleno = 3 (0x3), region = 90 }
 0x3f1   :  { %632 = vsyncpa [#allocation3], 1 }
 0x3f2   :  { %634 = vsyncpa [#allocation3 + $0x1], 1 }

// kernel: transformer_model_forward.5
= control target key start
LH: loop header
LB: loop body
LE: loop exit
PB: predicated region body
PF: predicated region fallthrough
CT: control target
= control target key end

     0   :  { %s2160_s29 = smov 0   ;;  %s2388_s0 = inlined_call_operand.vmem [shape: f32[2,8,32], index: 0, kind: input, shape index: {}]   ;;  %s2389_s1 = inlined_call_operand.vmem [shape: f32[2,1,8], index: 1, kind: input, shape index: {}]   ;;  %s2390_s2 = inlined_call_operand.vmem [shape: f32[32,96], index: 2, kind: input, shape index: {}]   ;;  %s2391_s3 = inlined_call_operand.vmem [shape: f32[1,96], index: 3, kind: input, shape index: {}]   ;;  %s2392_s4 = inlined_call_operand.vmem [shape: f32[32,32], index: 4, kind: input, shape index: {}]   ;;  %s2393_s5 = inlined_call_operand.vmem [shape: f32[1,32], index: 5, kind: input, shape index: {}]   ;;  %s2394_s6 = inlined_call_operand.vmem [shape: f32[1,32], index: 6, kind: input, shape index: {}]   ;;  %s2395_s7 = inlined_call_operand.vmem [shape: f32[1,32], index: 7, kind: input, shape index: {}]   ;;  %s2396_s8 = inlined_call_operand.vmem [shape: f32[32,64], index: 8, kind: input, shape index: {}]   ;;  %s2397_s9 = inlined_call_operand.vmem [shape: f32[1,64], index: 9, kind: input, shape index: {}]   ;;  %s2398_s10 = inlined_call_operand.vmem [shape: f32[64,32], index: 10, kind: input, shape index: {}]   ;;  %s2399_s11 = inlined_call_operand.vmem [shape: f32[1,32], index: 11, kind: input, shape index: {}]   ;;  %s2400_s12 = inlined_call_operand.vmem [shape: f32[1,32], index: 12, kind: input, shape index: {}]   ;;  %s2401_s13 = inlined_call_operand.vmem [shape: f32[1,32], index: 13, kind: input, shape index: {}]   ;;  %s2402_s14 = inlined_call_operand.vmem [shape: f32[2,8,32], index: 14, kind: output, shape index: {}]  }
   0x1 LB: > { %s1842_s30 = sadd.s32 4294967295, %s2070_s29   ;;  %p1846_p0 = scmp.ge.s32.totalorder %s2070_s29, 1  ;;  %s2070_s29 = sphi %s2160_s29, %s24_s29  }
   0x2   : > { %p419_p1 = scmp.lt.s32.totalorder %s2070_s29, 3 }
   0x4   : > { %p420_p2 = pnand %p1846_p0, %p419_p1 }
   0x5   : > { %p466_p3 = scmp.lt.s32.totalorder (!%p420_p2), %s1842_s30, 1  ;;  %s2074_s15 = smov (!%p420_p2), 120  }
   0x6   : > { %423 = sbr.rel (%p420_p2) target bundleno = 3468 (0xd8c), region = 76  ;;  %s2075_s16 = smov (!%p420_p2), 96  }
   0x7   : > { %s2076_s17 = smov (!%p420_p2), 88   ;;  %s2077_s22 = smov (!%p420_p2), 56  }
   0x8   : > { %s2078_s23 = smov (!%p420_p2), 64   ;;  %s2079_s24 = smov (!%p420_p2), 80  }
   0x9   : > { %s2080_s25 = smov (!%p420_p2), 112   ;;  %s2083_s18 = smov (!%p420_p2), 48  }
   0xb   : > { %v482_v0 = vld [vmem:[%s2390_s2 + $0x18] sm:$0xff]  ;;  %v2072_v1 = vmov 0.0   ;;  %v481_v2 = vld [vmem:[%s2390_s2 + $0x10] sm:$0xff]  ;;  %vm2073_vm0 = vmmov 0   ;;  %s2404_s30 = smov (!%p466_p3, %s1842_s30), 1  ;;  %v480_v3 = vld [vmem:[%s2390_s2 + $0x8] sm:$0xff] }
   0xc   : > { %1922 = vmatprep.subr.mxu0 %v2072_v1  ;;  %1930 = vmatprep.mubr.msk.f32.mxu0 %vm2073_vm0, %v2072_v1  ;;  %s1847_s21 = sshll.u32 %s2404_s30, 3  ;;  %v479_v4 = vld [vmem:[%s2390_s2] sm:$0xff]  ;;  %vm490_vm1 = vcmask 261120   ;;  %vm571_vm2 = vcmask 64512   ;;  %s472_s20 = scalar_lea.vmem %s2389_s1, %s2404_s30  ;;  %v565_v43 = vld [vmem:[%s2392_s4 + $0x8] sm:$0xff]  ;;  %vm1675_vm3 = vcmask 523264  }
   0xd   : > { %1923 = vmatpush3.msra.mxu0 %v482_v0  ;;  %1938 = vmatprep.subr.mxu1 %v2072_v1  ;;  %s469_s26 = scalar_lea.vmem %s2388_s0, %s1847_s21  ;;  %v1849_v6 = vld [vmem:[%s2391_s3] ss:$0 sm:$0xff] }
   0xe   : > { %1924 = vmatprep.subr.mxu0 %v2072_v1  ;;  %1940 = vmatprep.mubr.msk.f32.mxu1 %vm2073_vm0, %v2072_v1  ;;  %v2196_v5 = vld [vmem:[%s469_s26] sm:$0xff]  ;;  %s476_s26 = scalar_lea.vmem %s2402_s14, %s1847_s21 }
   0xf   : > { %1925 = vmatpush3.msra.mxu0 %v481_v2  ;;  %v2227_v14 = vld [vmem:[%s472_s20] ss:$0 sm:$0xff] }
  0x10   : > { %1926 = vmatprep.subr.mxu0 %v2072_v1  ;;  %v564_v42 = vld [vmem:[%s2392_s4] sm:$0xff] }
  0x11   : > { %1927 = vmatpush3.msra.mxu0 %v480_v3 }
  0x12   : > { %1928 = vmatprep.subr.mxu0 %v2072_v1 }
  0x13   : > { %1929 = vmatpush3.msra.mxu0 %v479_v4 }
  0x14   : > { %1931 = vmatmul.mubr.msk.f32.vlgmr.msra.gmra.mxu0 %vm490_vm1, %v2196_v5  ;;  %1933 = vmatprep.subr.mxu0 %v2072_v1 }
  0x15   : > { %1935 = vmatprep.mubr.msk.f32.mxu0 %vm2073_vm0, %v2072_v1 }
  0xd4   : > { %v560_v7 = vpop.f32.mrf.mxu0 }
  0xd5   : > { %v2207_v8 = vadd.f32 %v1849_v6, %v560_v7 }
  0xd6   : > { %v1932_v9 = vpop.f32.mrf.mxu0 }
  0xd7   : > { %741 = vrot.lane.b32.xlu1 %v2207_v8, %s2074_s15  ;;  %569 = vrot.lane.b32.xlu0 %v2207_v8, %s2075_s16  ;;  %s2081_s16 = smov 72  }
  0xdb   : > { %743 = vrot.lane.b32.xlu0 %v2207_v8, %s2076_s17  ;;  %s2082_s17 = smov 104  }
 0x149   : > { %v570_v10 = vpop.permute.xlu0 %569  ;;  %v742_v12 = vpop.permute.xlu1 %741 }
 0x14a   : > { %1934 = vmatpush3.xpose.msk.msra.mxu0 %vm571_vm2, %v570_v10  ;;  %v566_v10 = vld [vmem:[%s2392_s4 + $0x10] sm:$0xff] }
 0x14b   : > { %1943 = vmatprep.subr.mxu0 %v2072_v1 }
 0x14d   : > { %1936 = vmatmul.mubr.msk.f32.vlgmr.msra.gmra.mxu0 %vm571_vm2, %v2207_v8  ;;  %v744_v11 = vpop.permute.xlu0 %743 }
 0x14e   : > { %1944 = vmatpush3.xpose.msk.msra.mxu0 %vm571_vm2, %v744_v11  ;;  %1945 = vmatprep.mubr.msk.f32.mxu0 %vm2073_vm0, %v2072_v1 }
 0x14f   : > { %1953 = vmatprep.subr.mxu0 %v2072_v1 }
 0x151   : > { %1946 = vmatmul.mubr.msk.f32.vlgmr.msra.gmra.mxu0 %vm571_vm2, %v742_v12 }
 0x152   : > { %1955 = vmatprep.mubr.msk.f32.mxu0 %vm2073_vm0, %v2072_v1  ;;  %1954 = vmatpush3.msra.mxu0 %v565_v43 }
 0x153   : > { %1963 = vmatprep.subr.mxu0 %v2072_v1 }
 0x20d   : > { %v642_v13 = vpop.f32.mrf.mxu0 }
 0x20e   : > { %v646_v15 = vmul.f32 0.35355338, %v642_v13 }
 0x20f   : > { %v1937_v16 = vpop.f32.mrf.mxu0 }
 0x210   : > { %v653_v17 = vadd.f32 %v2227_v14, %v646_v15 }
 0x211   : > { %v815_v18 = vpop.f32.mrf.mxu0 }
 0x212   : > { %v819_v19 = vmul.f32 0.35355338, %v815_v18  ;;  %v654_v20 = vsel %vm571_vm2, %v653_v17, -inf }
 0x213   : > { %655 = vmax.xlane.f32.xlu1 %v654_v20  ;;  %v1947_v21 = vpop.f32.mrf.mxu0 }
 0x214   : > { %v820_v22 = vadd.f32 %v2227_v14, %v819_v19 }
 0x216   : > { %v821_v23 = vsel %vm571_vm2, %v820_v22, -inf }
 0x217   : > { %822 = vmax.xlane.f32.xlu0 %v821_v23 }
 0x29c   : > { %v656_v24 = vpop.xlane.xlu1 %655 }
 0x29d   : > { %v657_v25 = vsub.f32 %v653_v17, %v656_v24 }
 0x29f   : > { %v658_v26 = vmul.f32 1.442695, %v657_v25 }
 0x2a0   : > { %v823_v27 = vpop.xlane.xlu0 %822 }
 0x2a1   : > { %2044 = vpow2.f32 %v658_v26  ;;  %v824_v28 = vsub.f32 %v820_v22, %v823_v27 }
 0x2a3   : > { %v825_v29 = vmul.f32 1.442695, %v824_v28 }
 0x2a5   : > { %2046 = vpow2.f32 %v825_v29 }
 0x2ae   : > { %v2045_v30 = vpop.eup %2044 }
 0x2af   : > { %v660_v31 = vsel %vm571_vm2, %v2045_v30, 0.0 }
 0x2b0   : > { %661 = vadd.xlane.f32.xlu0 %v660_v31 }
 0x2b2   : > { %v2047_v32 = vpop.eup %2046 }
 0x2b3   : > { %v827_v33 = vsel %vm571_vm2, %v2047_v32, 0.0 }
 0x2b4   : > { %828 = vadd.xlane.f32.xlu1 %v827_v33  ;;  %v1868_v33 = vld [vmem:[%s2393_s5] ss:$0 sm:$0xff] }
 0x2c5   : > { %832 = vrot.lane.b32.xlu1 %v2207_v8, %s2077_s22  ;;  %s2084_s22 = smov 40  }
 0x2c6   : > { %665 = vrot.lane.b32.xlu0 %v2207_v8, %s2078_s23 }
 0x2c9   : > { %1056 = vrot.lane.b32.xlu1 %v2207_v8, %s2079_s24 }
 0x2ca   : > { %1054 = vrot.lane.b32.xlu0 %v2207_v8, %s2080_s25 }
 0x339   : > { %v662_v34 = vpop.xlane.xlu0 %661 }
 0x33a   : > { %2048 = vrcp.f32 %v662_v34 }
 0x33d   : > { %v829_v35 = vpop.xlane.xlu1 %828  ;;  %v666_v36 = vpop.permute.xlu0 %665 }
 0x33e   : > { %2050 = vrcp.f32 %v829_v35  ;;  %1939 = vmatpush3.msra.mxu1 %v666_v36 }
 0x33f   : > { %1948 = vmatprep.subr.mxu1 %v2072_v1 }
 0x341   : > { %v833_v39 = vpop.permute.xlu1 %832  ;;  %v1055_v49 = vpop.permute.xlu0 %1054 }
 0x345   : > { %v1057_v47 = vpop.permute.xlu1 %1056 }
 0x347   : > { %v2049_v37 = vpop.eup %2048 }
 0x348   : > { %v664_v38 = vmul.f32 %v2049_v37, %v2045_v30 }
 0x34a   : > { %1941 = vmatmul.mubr.msk.f32.vlgmr.msra.gmra.mxu1 %vm571_vm2, %v664_v38 }
 0x34b   : > { %v2051_v40 = vpop.eup %2050  ;;  %1949 = vmatpush3.msra.mxu1 %v833_v39  ;;  %1950 = vmatprep.mubr.msk.f32.mxu1 %vm2073_vm0, %v2072_v1 }
 0x34c   : > { %v831_v41 = vmul.f32 %v2051_v40, %v2047_v32  ;;  %1958 = vmatprep.subr.mxu1 %v2072_v1 }
 0x34e   : > { %1951 = vmatmul.mubr.msk.f32.vlgmr.msra.gmra.mxu1 %vm571_vm2, %v831_v41 }
 0x34f   : > { %1960 = vmatprep.mubr.msk.f32.mxu1 %vm2073_vm0, %v2072_v1  ;;  %1959 = vmatpush3.msra.mxu1 %v564_v42 }
 0x350   : > { %1968 = vmatprep.subr.mxu1 %v2072_v1 }
 0x40a   : > { %v737_v44 = vpop.f32.mrf.mxu1 }
 0x40b   : > { %1961 = vmatmul.mubr.msk.f32.vlgmr.msra.gmra.mxu1 %vm571_vm2, %v737_v44  ;;  %v1578_v44 = vld [vmem:[%s2396_s8 + $0x18] sm:$0xff] }
 0x40c   : > { %v1942_v45 = vpop.f32.mrf.mxu1  ;;  %1970 = vmatprep.mubr.msk.f32.mxu1 %vm2073_vm0, %v2072_v1 }
 0x40d   : > { %v1577_v45 = vld [vmem:[%s2396_s8 + $0x10] sm:$0xff] }
 0x40e   : > { %v904_v46 = vpop.f32.mrf.mxu1 }
 0x40f   : > { %1956 = vmatmul.mubr.msk.f32.vlgmr.msra.gmra.mxu0 %vm571_vm2, %v904_v46  ;;  %v1575_v46 = vld [vmem:[%s2396_s8] sm:$0xff] }
 0x410   : > { %1964 = vmatpush3.xpose.msk.msra.mxu0 %vm571_vm2, %v1057_v47  ;;  %v1952_v48 = vpop.f32.mrf.mxu1  ;;  %1965 = vmatprep.mubr.msk.f32.mxu0 %vm2073_vm0, %v2072_v1  ;;  %v1667_v47 = vld [vmem:[%s2398_s10 + $0x38] sm:$0xff] }
 0x411   : > { %1973 = vmatprep.subr.mxu0 %v2072_v1  ;;  %v1666_v48 = vld [vmem:[%s2398_s10 + $0x30] sm:$0xff] }
 0x413   : > { %1966 = vmatmul.mubr.msk.f32.vlgmr.msra.gmra.mxu0 %vm571_vm2, %v1055_v49  ;;  %v1665_v49 = vld [vmem:[%s2398_s10 + $0x28] sm:$0xff] }
 0x414   : > { %1975 = vmatprep.mubr.msk.f32.mxu0 %vm2073_vm0, %v2072_v1  ;;  %1974 = vmatpush3.msra.mxu0 %v566_v10 }
 0x415   : > { %1983 = vmatprep.subr.mxu0 %v2072_v1 }
 0x4cb   : > { %v1050_v50 = vpop.f32.mrf.mxu1 }
 0x4cd   : > { %v1962_v51 = vpop.f32.mrf.mxu1 }
 0x4ce   : > { %v1663_v51 = vld [vmem:[%s2398_s10 + $0x18] sm:$0xff] }
 0x4cf   : > { %v977_v52 = vpop.f32.mrf.mxu0 }
 0x4d0   : > { %v2266_v53 = vadd.f32 %v1050_v50, %v977_v52  ;;  %v1664_v50 = vld [vmem:[%s2398_s10 + $0x20] sm:$0xff] }
 0x4d1   : > { %v1957_v54 = vpop.f32.mrf.mxu0 }
 0x4d3   : > { %v1128_v55 = vpop.f32.mrf.mxu0 }
 0x4d4   : > { %v1132_v56 = vmul.f32 0.35355338, %v1128_v55 }
 0x4d5   : > { %v1967_v57 = vpop.f32.mrf.mxu0 }
 0x4d6   : > { %v1133_v58 = vadd.f32 %v2227_v14, %v1132_v56  ;;  %v1869_v56 = vld [vmem:[%s2394_s6] ss:$0 sm:$0xff] }
 0x4d8   : > { %v1134_v59 = vsel %vm571_vm2, %v1133_v58, -inf }
 0x4d9   : > { %1135 = vmax.xlane.f32.xlu1 %v1134_v59 }
 0x4ea   : > { %1297 = vrot.lane.b32.xlu1 %v2207_v8, %s2081_s16 }
 0x4ee   : > { %1295 = vrot.lane.b32.xlu1 %v2207_v8, %s2082_s17 }
 0x562   : > { %v1136_v60 = vpop.xlane.xlu1 %1135 }
 0x563   : > { %v1137_v61 = vsub.f32 %v1133_v58, %v1136_v60  ;;  %v1870_v58 = vld [vmem:[%s2395_s7] ss:$0 sm:$0xff] }
 0x565   : > { %v1138_v62 = vmul.f32 1.442695, %v1137_v61  ;;  %v1662_v61 = vld [vmem:[%s2398_s10 + $0x10] sm:$0xff] }
 0x566   : > { %v1298_v6 = vpop.permute.xlu1 %1297 }
 0x567   : > { %2052 = vpow2.f32 %v1138_v62  ;;  %v1661_v62 = vld [vmem:[%s2398_s10 + $0x8] sm:$0xff] }
 0x56a   : > { %v1296_v9 = vpop.permute.xlu1 %1295 }
 0x574   : > { %v2053_v63 = vpop.eup %2052 }
 0x575   : > { %v1140_v0 = vsel %vm571_vm2, %v2053_v63, 0.0 }
 0x576   : > { %1141 = vadd.xlane.f32.xlu0 %v1140_v0  ;;  %v1871_v0 = vld [vmem:[%s2397_s9] ss:$0 sm:$0xff] }
 0x58c   : > { %1145 = vrot.lane.b32.xlu0 %v2207_v8, %s2083_s18 }
 0x5ff   : > { %v1142_v2 = vpop.xlane.xlu0 %1141 }
 0x600   : > { %2054 = vrcp.f32 %v1142_v2 }
 0x603   : > { %v1146_v3 = vpop.permute.xlu0 %1145 }
 0x604   : > { %1969 = vmatpush3.msra.mxu1 %v1146_v3 }
 0x605   : > { %1978 = vmatprep.subr.mxu1 %v2072_v1 }
 0x60d   : > { %v2055_v4 = vpop.eup %2054 }
 0x60e   : > { %v1144_v7 = vmul.f32 %v2055_v4, %v2053_v63  ;;  %v1660_v63 = vld [vmem:[%s2398_s10] sm:$0xff] }
 0x610   : > { %1971 = vmatmul.mubr.msk.f32.vlgmr.msra.gmra.mxu1 %vm571_vm2, %v1144_v7  ;;  %v1873_v7 = vld [vmem:[%s2399_s11] ss:$0 sm:$0xff] }
 0x611   : > { %1979 = vmatpush3.xpose.msk.msra.mxu1 %vm571_vm2, %v1298_v6  ;;  %1980 = vmatprep.mubr.msk.f32.mxu1 %vm2073_vm0, %v2072_v1 }
 0x612   : > { %1988 = vmatprep.subr.mxu1 %v2072_v1 }
 0x614   : > { %1981 = vmatmul.mubr.msk.f32.vlgmr.msra.gmra.mxu1 %vm571_vm2, %v1296_v9 }
 0x615   : > { %1990 = vmatprep.mubr.msk.f32.mxu1 %vm2073_vm0, %v2072_v1 }
 0x6d0   : > { %v1217_v11 = vpop.f32.mrf.mxu1 }
 0x6d1   : > { %1976 = vmatmul.mubr.msk.f32.vlgmr.msra.gmra.mxu0 %vm571_vm2, %v1217_v11 }
 0x6d2   : > { %v1972_v12 = vpop.f32.mrf.mxu1  ;;  %1985 = vmatprep.mubr.msk.f32.mxu0 %vm2073_vm0, %v2072_v1 }
 0x6d4   : > { %v1369_v13 = vpop.f32.mrf.mxu1 }
 0x6d5   : > { %v1373_v15 = vmul.f32 0.35355338, %v1369_v13 }
 0x6d6   : > { %v1982_v16 = vpop.f32.mrf.mxu1 }
 0x6d7   : > { %v1374_v17 = vadd.f32 %v2227_v14, %v1373_v15  ;;  %v567_v14 = vld [vmem:[%s2392_s4 + $0x18] sm:$0xff] }
 0x6d8   : > { %1989 = vmatpush3.msra.mxu1 %v567_v14 }
 0x6d9   : > { %v1375_v18 = vsel %vm571_vm2, %v1374_v17, -inf  ;;  %2004 = vmatprep.subr.mxu1 %v2072_v1 }
 0x6da   : > { %1376 = vmax.xlane.f32.xlu0 %v1375_v18 }
 0x6f0   : > { %1386 = vrot.lane.b32.xlu0 %v2207_v8, %s2084_s22 }
 0x763   : > { %v1377_v19 = vpop.xlane.xlu0 %1376 }
 0x764   : > { %v1378_v20 = vsub.f32 %v1374_v17, %v1377_v19 }
 0x766   : > { %v1379_v21 = vmul.f32 1.442695, %v1378_v20 }
 0x767   : > { %v1387_v22 = vpop.permute.xlu0 %1386 }
 0x768   : > { %2056 = vpow2.f32 %v1379_v21  ;;  %1984 = vmatpush3.msra.mxu0 %v1387_v22 }
 0x769   : > { %1993 = vmatprep.subr.mxu0 %v2072_v1 }
 0x775   : > { %v2057_v23 = vpop.eup %2056 }
 0x776   : > { %v1381_v24 = vsel %vm571_vm2, %v2057_v23, 0.0 }
 0x777   : > { %1382 = vadd.xlane.f32.xlu1 %v1381_v24 }
 0x791   : > { %v1290_v25 = vpop.f32.mrf.mxu0 }
 0x792   : > { %v1294_v26 = vadd.f32 %v1290_v25, %v2266_v53  ;;  %v1876_v25 = vld [vmem:[%s2401_s13] ss:$0 sm:$0xff] }
 0x793   : > { %v1977_v8 = vpop.f32.mrf.mxu0 }
 0x800   : > { %v1383_v27 = vpop.xlane.xlu1 %1382 }
 0x801   : > { %2058 = vrcp.f32 %v1383_v27 }
 0x80e   : > { %v2059_v28 = vpop.eup %2058 }
 0x80f   : > { %v1385_v29 = vmul.f32 %v2059_v28, %v2057_v23  ;;  %v1875_v23 = vld [vmem:[%s2400_s12] ss:$0 sm:$0xff] }
 0x811   : > { %1986 = vmatmul.mubr.msk.f32.vlgmr.msra.gmra.mxu0 %vm571_vm2, %v1385_v29 }
 0x812   : > { %2001 = vmatprep.mubr.msk.f32.mxu0 %vm2073_vm0, %v2072_v1  ;;  %1994 = vmatpush3.msra.mxu0 %v1578_v44 }
 0x813   : > { %1995 = vmatprep.subr.mxu0 %v2072_v1 }
 0x814   : > { %1996 = vmatpush3.msra.mxu0 %v1577_v45 }
 0x815   : > { %1997 = vmatprep.subr.mxu0 %v2072_v1 }
 0x8d1   : > { %v1458_v30 = vpop.f32.mrf.mxu0 }
 0x8d2   : > { %1991 = vmatmul.mubr.msk.f32.vlgmr.msra.gmra.mxu1 %vm571_vm2, %v1458_v30 }
 0x8d3   : > { %v1987_v31 = vpop.f32.mrf.mxu0  ;;  %2020 = vmatprep.mubr.msk.f32.mxu1 %vm2073_vm0, %v2072_v1  ;;  %2005 = vmatpush3.msra.mxu1 %v1667_v47 }
 0x8d4   : > { %2006 = vmatprep.subr.mxu1 %v2072_v1 }
 0x8d5   : > { %2007 = vmatpush3.msra.mxu1 %v1666_v48 }
 0x8d6   : > { %2008 = vmatprep.subr.mxu1 %v2072_v1 }
 0x8d7   : > { %2009 = vmatpush3.msra.mxu1 %v1665_v49 }
 0x8d8   : > { %2010 = vmatprep.subr.mxu1 %v2072_v1 }
 0x8d9   : > { %2011 = vmatpush3.msra.mxu1 %v1664_v50 }
 0x8da   : > { %2012 = vmatprep.subr.mxu1 %v2072_v1 }
 0x8db   : > { %2013 = vmatpush3.msra.mxu1 %v1663_v51 }
 0x8dc   : > { %2014 = vmatprep.subr.mxu1 %v2072_v1 }
 0x8dd   : > { %2015 = vmatpush3.msra.mxu1 %v1662_v61 }
 0x8de   : > { %2016 = vmatprep.subr.mxu1 %v2072_v1 }
 0x8df   : > { %2017 = vmatpush3.msra.mxu1 %v1661_v62 }
 0x8e0   : > { %2018 = vmatprep.subr.mxu1 %v2072_v1 }
 0x8e1   : > { %2019 = vmatpush3.msra.mxu1 %v1660_v63 }
 0x992   : > { %v1531_v32 = vpop.f32.mrf.mxu1 }
 0x993   : > { %v1535_v34 = vadd.f32 %v1531_v32, %v1294_v26 }
 0x994   : > { %v1992_v35 = vpop.f32.mrf.mxu1 }
 0x995   : > { %v1543_v36 = vadd.f32 %v1868_v33, %v1535_v34 }
 0x997   : > { %v1544_v37 = vadd.f32 %v1543_v36, %v2196_v5  ;;  %v1576_v5 = vld [vmem:[%s2396_s8 + $0x8] sm:$0xff] }
 0x998   : > { %1998 = vmatpush3.msra.mxu0 %v1576_v5 }
 0x999   : > { %v1547_v38 = vsel %vm490_vm1, %v1544_v37, 0.0  ;;  %1999 = vmatprep.subr.mxu0 %v2072_v1 }
 0x99a   : > { %1548 = vadd.xlane.f32.xlu1 %v1547_v38  ;;  %2000 = vmatpush3.msra.mxu0 %v1575_v46 }
 0xa23   : > { %v1549_v39 = vpop.xlane.xlu1 %1548 }
 0xa24   : > { %v1551_v40 = vmul.f32 0.03125, %v1549_v39 }
 0xa26   : > { %v1552_v41 = vsub.f32 %v1544_v37, %v1551_v40 }
 0xa28   : > { %v1553_v42 = vmul.f32 %v1552_v41, %v1552_v41 }
 0xa2a   : > { %v1554_v43 = vsel %vm490_vm1, %v1553_v42, 0.0 }
 0xa2b   : > { %1555 = vadd.xlane.f32.xlu1 %v1554_v43 }
 0xab4   : > { %v1556_v52 = vpop.xlane.xlu1 %1555 }
 0xab5   : > { %v1557_v53 = vmul.f32 0.03125, %v1556_v52 }
 0xab7   : > { %v1558_v54 = vadd.f32 1e-05, %v1557_v53 }
 0xab9   : > { %2060 = vrsqrt.f32 %v1558_v54 }
 0xac6   : > { %v2061_v55 = vpop.eup %2060 }
 0xac7   : > { %v1560_v57 = vmul.f32 %v2061_v55, %v1552_v41 }
 0xac9   : > { %v1567_v59 = vmul.f32 %v1869_v56, %v1560_v57 }
 0xacb   : > { %v1574_v60 = vadd.f32 %v1870_v58, %v1567_v59 }
 0xacd   : > { %2002 = vmatmul.mubr.msk.f32.vlgmr.msra.gmra.mxu0 %vm490_vm1, %v1574_v60 }
 0xb8d   : > { %v1655_v2 = vpop.f32.mrf.mxu0 }
 0xb8e   : > { %v1656_v3 = vadd.f32 %v1871_v0, %v1655_v2 }
 0xb8f   : > { %v2003_v4 = vpop.f32.mrf.mxu0 }
 0xb90   : > { %v1659_v6 = vmax.f32 %v1656_v3, 0.0 }
 0xb92   : > { %2021 = vmatmul.mubr.msk.f32.vlgmr.msra.gmra.mxu1 %vm1675_vm3, %v1659_v6 }
 0xc52   : > { %v1745_v9 = vpop.f32.mrf.mxu1 }
 0xc53   : > { %v1746_v10 = vadd.f32 %v1873_v7, %v1745_v9 }
 0xc54   : > { %v2022_v11 = vpop.f32.mrf.mxu1 }
 0xc55   : > { %v1749_v12 = vadd.f32 %v1746_v10, %v1574_v60 }
 0xc57   : > { %v1752_v1 = vsel %vm490_vm1, %v1749_v12, 0.0 }
 0xc58   : > { %1753 = vadd.xlane.f32.xlu1 %v1752_v1 }
 0xce1   : > { %v1754_v13 = vpop.xlane.xlu1 %1753 }
 0xce2   : > { %v1755_v15 = vmul.f32 0.03125, %v1754_v13 }
 0xce4   : > { %v1756_v16 = vsub.f32 %v1749_v12, %v1755_v15 }
 0xce6   : > { %v1757_v17 = vmul.f32 %v1756_v16, %v1756_v16 }
 0xce8   : > { %v1758_v18 = vsel %vm490_vm1, %v1757_v17, 0.0 }
 0xce9   : > { %1759 = vadd.xlane.f32.xlu1 %v1758_v18 }
 0xd72   : > { %v1760_v19 = vpop.xlane.xlu1 %1759 }
 0xd73   : > { %v1761_v20 = vmul.f32 0.03125, %v1760_v19 }
 0xd75   : > { %v1762_v21 = vadd.f32 1e-05, %v1761_v20 }
 0xd77   : > { %2062 = vrsqrt.f32 %v1762_v21 }
 0xd84   : > { %v2063_v22 = vpop.eup %2062 }
 0xd85   : > { %v1764_v24 = vmul.f32 %v2063_v22, %v1756_v16 }
 0xd87   : > { %v1771_v14 = vmul.f32 %v1875_v23, %v1764_v24 }
 0xd89   : > { %v1778_v26 = vadd.f32 %v1876_v25, %v1771_v14 }
 0xd8b   : > { %1779 = vst.msk [vmem:[%s476_s26] sm:$0xff] %vm490_vm1, %v1778_v26 }
 0xd8c PF: > { %s24_s29 = sadd.s32 1, %s2070_s29  }
 0xd8d   : > { %p21_p4 = scmp.ge.s32.totalorder %s24_s29, 4  }
 0xd8f   :  { %23 = sbr.rel (!%p21_p4) target bundleno = 1 (0x1), region = 109 }

</bundles_post_ra>
